<compile_context>
chip_gen: v7x
topology: tpu7x:2x2x1
jax: 0.10.0
libtpu: 0.0.40
codegen_flags: <defaults>
</compile_context>

<pallas_src>
import jax
import jax.numpy as jnp
from jax.experimental import pallas as pl
from jax.experimental.pallas import tpu as pltpu


# ----------------------------- fused Pallas kernel ---------------------------


def _make_fused_kernel(num_layers, S, B, H, V):
    """Builds the fused forward kernel (static shapes closed over)."""
    H2 = 2 * H

    def kernel(*refs):
        # refs = [ids1 (S*B,1) i32, ids2 (S*B,1) i32, emb (V,D) bf16,
        #         L x (wihm (2Din,8H) bf16, whhm (2H,8H) bf16, bm (1,8H) f32),
        #         w_lin (S*2H,O) bf16, b_lin (1,O) f32]
        #        + out_ref (B,O) f32 + h_scr scratch (S*B, 2H) f32
        ids1_ref, ids2_ref, emb_ref = refs[0:3]
        layer_refs = refs[3:3 + 3 * num_layers]
        w_lin_ref = refs[3 + 3 * num_layers]
        b_lin_ref = refs[4 + 3 * num_layers]
        out_ref = refs[5 + 3 * num_layers]
        h_scr = refs[6 + 3 * num_layers]

        emb = emb_ref[...]                                  # (V, D) bf16

        def embed(ids_ref):
            # One-hot MXU gather; rows are time-major (row t*B + b).
            ids = ids_ref[...]                              # (S*B, 1) int32
            iota = jax.lax.broadcasted_iota(jnp.int32, (S * B, V), 1)
            onehot = (iota == ids).astype(jnp.bfloat16)     # (S*B, V)
            return jnp.dot(onehot, emb, preferred_element_type=jnp.float32)

        # Layer-0 input: [emb(ids1) | emb(ids2)] packed along lanes -> (S*B, 2D)
        x_all = jnp.concatenate([embed(ids1_ref), embed(ids2_ref)],
                                axis=1).astype(jnp.bfloat16)

        for l in range(num_layers):
            wihm = layer_refs[3 * l + 0][...]               # (2*Din, 8H) bf16
            whhm = layer_refs[3 * l + 1][...]               # (2H, 8H)    bf16
            bm = layer_refs[3 * l + 2][...]                 # (1, 8H)     f32

            # Hoisted input->gate matmul for all timesteps (full sublane tile).
            xg = jnp.dot(x_all, wihm,
                         preferred_element_type=jnp.float32) + bm   # (S*B, 8H)

            h = jnp.zeros((B, H2), jnp.float32)             # [h1 | h2]
            c = jnp.zeros((B, H2), jnp.float32)             # [c1 | c2]
            for t in range(S):                              # serial recurrence
                gates = xg[t * B:(t + 1) * B, :] + jnp.dot(
                    h.astype(jnp.bfloat16), whhm,
                    preferred_element_type=jnp.float32)     # (B, 8H)
                # Gate columns: [i1 i2 | f1 f2 | g1 g2 | o1 o2]; g columns were
                # pre-scaled by 2, so tanh(g) = 2*sigmoid(2g) - 1 and the only
                # per-step transcendentals are one sigmoid + tanh(c).
                sig = jax.nn.sigmoid(gates)
                i = sig[:, 0 * H2:1 * H2]
                f = sig[:, 1 * H2:2 * H2]
                g = 2.0 * sig[:, 2 * H2:3 * H2] - 1.0
                o = sig[:, 3 * H2:4 * H2]
                c = f * c + i * g
                h = o * jnp.tanh(c)
                h_scr[pl.ds(t * B, B), :] = h               # time-major store
            if l + 1 < num_layers:
                x_all = h_scr[...].astype(jnp.bfloat16)     # next layer input

        # Epilogue: cat(out1, out2, dim=2) -> Flatten -> Linear -> sigmoid.
        # Merged h_t is exactly [out1[:,t,:] | out2[:,t,:]], so the linear is
        # an accumulation over static row slices of w_lin (no lane concats).
        O = b_lin_ref.shape[1]
        z = jnp.zeros((B, O), jnp.float32)
        for t in range(S):
            ht = h_scr[pl.ds(t * B, B), :].astype(jnp.bfloat16)   # (B, 2H)
            wt = w_lin_ref[pl.ds(t * H2, H2), :]                  # (2H, O)
            z = z + jnp.dot(ht, wt, preferred_element_type=jnp.float32)
        out_ref[...] = jax.nn.sigmoid(z + b_lin_ref[...])

    return kernel


# ------------------------------ forward wrapper ------------------------------


@jax.jit
def lstm_forward(in_one, in_two, packed):
    B, S = in_one.shape
    layers = packed["layers"]
    num_layers = len(layers)
    H2 = layers[0][1].shape[0]                  # whhm is (2H, 8H)
    H = H2 // 2
    V = packed["embedding"].shape[0]
    O = packed["w_lin"].shape[1]
    # Flatten -> Linear only lines up if seq_len == num_layers*(bdir+1).
    assert packed["w_lin"].shape[0] == S * H2, (
        "seq_len must equal num_layers*(int(flag_bdir)+1) for Flatten->Linear")

    # Time-major token-id columns (row t*B + b = ids[b, t]).
    ids1 = jnp.transpose(in_one).reshape(S * B, 1).astype(jnp.int32)
    ids2 = jnp.transpose(in_two).reshape(S * B, 1).astype(jnp.int32)

    flat_w = [w for layer in layers for w in layer]
    inputs = ([ids1, ids2, packed["embedding"]] + flat_w +
              [packed["w_lin"], packed["b_lin"]])

    vmem = pl.BlockSpec(memory_space=pltpu.MemorySpace.VMEM)
    kernel = _make_fused_kernel(num_layers, S, B, H, V)
    # TODO(synk): on v7x the two stacks could instead be split across the two
    # TensorCores (size-2 parallel grid); the block-diagonal merge used here
    # was chosen since it also helps v5e/v6e and the two are mutually exclusive.
    return pl.pallas_call(
        kernel,
        out_shape=jax.ShapeDtypeStruct((B, O), jnp.float32),
        in_specs=[vmem] * len(inputs),
        out_specs=vmem,
        scratch_shapes=[pltpu.VMEM((S * B, H2), jnp.float32)],
    )(*inputs)


# --------------------------- parameter construction --------------------------


def init_lstm_params(key, input_size, hidden_size, num_layers):
    """PyTorch-style uniform(-1/sqrt(H), 1/sqrt(H)) init, pre-transposed to
    (Din, 4H)/(H, 4H) with gate cols [i|f|g|o]; bias = b_ih + b_hh."""
    k = 1.0 / jnp.sqrt(jnp.array(hidden_size, jnp.float32))
    layers = []
    for l in range(num_layers):
        d_in = input_size if l == 0 else hidden_size
        key, k1, k2, k3, k4 = jax.random.split(key, 5)
        w_ih = jax.random.uniform(k1, (4 * hidden_size, d_in), jnp.float32, -k, k)
        w_hh = jax.random.uniform(k2, (4 * hidden_size, hidden_size), jnp.float32, -k, k)
        b_ih = jax.random.uniform(k3, (4 * hidden_size,), jnp.float32, -k, k)
        b_hh = jax.random.uniform(k4, (4 * hidden_size,), jnp.float32, -k, k)
        layers.append((w_ih.T, w_hh.T, (b_ih + b_hh)[None, :]))
    return key, layers


def init_params(key, vocab_size, input_size, hidden_size, num_layers,
                output_size, flag_bdir):
    key, ke = jax.random.split(key)
    embedding = jax.random.normal(ke, (vocab_size, input_size), jnp.float32)

    key, lstm1 = init_lstm_params(key, input_size, hidden_size, num_layers)
    key, lstm2 = init_lstm_params(key, input_size, hidden_size, num_layers)

    in_features = 2 * hidden_size * num_layers * (int(flag_bdir) + 1)
    kl = 1.0 / jnp.sqrt(jnp.array(in_features, jnp.float32))
    key, k1, k2 = jax.random.split(key, 3)
    w_lin = jax.random.uniform(k1, (output_size, in_features), jnp.float32, -kl, kl)
    b_lin = jax.random.uniform(k2, (output_size,), jnp.float32, -kl, kl)

    return {
        "embedding": embedding,
        "lstm1": lstm1,
        "lstm2": lstm2,
        "w_lin": w_lin.T,                 # (F, O)
        "b_lin": b_lin[None, :],          # (1, O)
    }


def _merge_gate_cols(a1, a2, H):
    """a1, a2: (R, 4H) with gate cols [i|f|g|o] -> (2R, 8H) block-diagonal,
    cols reordered to [i1 i2 f1 f2 g1 g2 o1 o2], stack-1 rows on top."""
    R = a1.shape[0]
    out = jnp.zeros((2 * R, 8 * H), jnp.float32)
    for gi in range(4):
        out = out.at[0:R, (2 * gi) * H:(2 * gi + 1) * H].set(a1[:, gi * H:(gi + 1) * H])
        out = out.at[R:2 * R, (2 * gi + 1) * H:(2 * gi + 2) * H].set(a2[:, gi * H:(gi + 1) * H])
    return out


def _merge_bias(b1, b2, H):
    out = jnp.zeros((1, 8 * H), jnp.float32)
    for gi in range(4):
        out = out.at[:, (2 * gi) * H:(2 * gi + 1) * H].set(b1[:, gi * H:(gi + 1) * H])
        out = out.at[:, (2 * gi + 1) * H:(2 * gi + 2) * H].set(b2[:, gi * H:(gi + 1) * H])
    return out


def pack_params(params):
    """Merge the two stacks into block-diagonal per-layer weights, pre-scale
    the g-gate columns by 2 (tanh(x) = 2*sigmoid(2x) - 1) and cast MXU
    operands to bfloat16."""
    H = params["lstm1"][0][1].shape[0]
    layers = []
    for (w1, u1, b1), (w2, u2, b2) in zip(params["lstm1"], params["lstm2"]):
        wihm = _merge_gate_cols(w1, w2, H)
        whhm = _merge_gate_cols(u1, u2, H)
        bm = _merge_bias(b1, b2, H)
        wihm = wihm.at[:, 4 * H:6 * H].multiply(2.0)
        whhm = whhm.at[:, 4 * H:6 * H].multiply(2.0)
        bm = bm.at[:, 4 * H:6 * H].multiply(2.0)
        layers.append((wihm.astype(jnp.bfloat16), whhm.astype(jnp.bfloat16), bm))
    return {
        "embedding": params["embedding"].astype(jnp.bfloat16),
        "layers": layers,
        "w_lin": params["w_lin"].astype(jnp.bfloat16),
        "b_lin": params["b_lin"],
    }


# ----------------------------------- main -------------------------------------

if __name__ == "__main__":
    vocab_size = 50
    input_size = 16
    hidden_size = 32
    num_layers = 4
    output_size = 2
    flag_bdir = False
    batch = 2
    seq_len = num_layers * (int(flag_bdir) + 1)   # = 4 (required by Flatten->Linear)

    key = jax.random.PRNGKey(0)
    params = init_params(key, vocab_size, input_size, hidden_size,
                         num_layers, output_size, flag_bdir)
    packed = pack_params(params)

    key, k1, k2 = jax.random.split(key, 3)
    in_one = jax.random.randint(k1, (batch, seq_len), 0, vocab_size, jnp.int32)
    in_two = jax.random.randint(k2, (batch, seq_len), 0, vocab_size, jnp.int32)

    out = lstm_forward(in_one, in_two, packed)
    out = jax.block_until_ready(out)
    assert out.shape == (batch, output_size)
    assert bool(jnp.all(jnp.isfinite(out)))
    assert bool(jnp.all((out >= 0.0) & (out <= 1.0)))
    print("KERNEL_OK")
</pallas_src>

<mosaic_0001>
module attributes {stable_mosaic.version = 11 : i64} {
  func.func @kernel(%arg0: memref<8x1xi32, #tpu.memory_space<vmem>>, %arg1: memref<8x1xi32, #tpu.memory_space<vmem>>, %arg2: memref<50x16xbf16, #tpu.memory_space<vmem>>, %arg3: memref<32x256xbf16, #tpu.memory_space<vmem>>, %arg4: memref<64x256xbf16, #tpu.memory_space<vmem>>, %arg5: memref<1x256xf32, #tpu.memory_space<vmem>>, %arg6: memref<64x256xbf16, #tpu.memory_space<vmem>>, %arg7: memref<64x256xbf16, #tpu.memory_space<vmem>>, %arg8: memref<1x256xf32, #tpu.memory_space<vmem>>, %arg9: memref<64x256xbf16, #tpu.memory_space<vmem>>, %arg10: memref<64x256xbf16, #tpu.memory_space<vmem>>, %arg11: memref<1x256xf32, #tpu.memory_space<vmem>>, %arg12: memref<64x256xbf16, #tpu.memory_space<vmem>>, %arg13: memref<64x256xbf16, #tpu.memory_space<vmem>>, %arg14: memref<1x256xf32, #tpu.memory_space<vmem>>, %arg15: memref<256x2xbf16, #tpu.memory_space<vmem>>, %arg16: memref<1x2xf32, #tpu.memory_space<vmem>>, %arg17: memref<2x2xf32, #tpu.memory_space<vmem>>, %arg18: memref<8x64xf32, #tpu.memory_space<vmem>>) attributes {dimension_semantics = [], scalar_prefetch = 0 : i64, scratch_operands = 1 : i64, tpu.core_type = #tpu.core_type<tc>} {
    %c0 = arith.constant 0 : index
    %c0_0 = arith.constant 0 : index
    %0 = vector.load %arg2[%c0, %c0_0] : memref<50x16xbf16, #tpu.memory_space<vmem>>, vector<50x16xbf16>
    %c0_1 = arith.constant 0 : index
    %c0_2 = arith.constant 0 : index
    %1 = vector.load %arg0[%c0_1, %c0_2] : memref<8x1xi32, #tpu.memory_space<vmem>>, vector<8x1xi32>
    %2 = tpu.iota {dimensions = array<i32: 1>} : vector<8x50xi32>
    %3 = vector.broadcast %1 : vector<8x1xi32> to vector<8x50xi32>
    %4 = arith.cmpi eq, %2, %3 : vector<8x50xi32>
    %5 = arith.extui %4 : vector<8x50xi1> to vector<8x50xi32>
    %6 = arith.sitofp %5 : vector<8x50xi32> to vector<8x50xf32>
    %7 = arith.truncf %6 : vector<8x50xf32> to vector<8x50xbf16>
    %cst = arith.constant dense<0.000000e+00> : vector<8x16xf32>
    %8 = tpu.matmul %7, %0, %cst {dimension_numbers = #tpu.dot_dimension_numbers<[1], [0], [0], [1], [0, 0, 1, 1], [], []>} : vector<8x50xbf16>, vector<50x16xbf16>, vector<8x16xf32> -> vector<8x16xf32>
    %c0_3 = arith.constant 0 : index
    %c0_4 = arith.constant 0 : index
    %9 = vector.load %arg1[%c0_3, %c0_4] : memref<8x1xi32, #tpu.memory_space<vmem>>, vector<8x1xi32>
    %10 = tpu.iota {dimensions = array<i32: 1>} : vector<8x50xi32>
    %11 = vector.broadcast %9 : vector<8x1xi32> to vector<8x50xi32>
    %12 = arith.cmpi eq, %10, %11 : vector<8x50xi32>
    %13 = arith.extui %12 : vector<8x50xi1> to vector<8x50xi32>
    %14 = arith.sitofp %13 : vector<8x50xi32> to vector<8x50xf32>
    %15 = arith.truncf %14 : vector<8x50xf32> to vector<8x50xbf16>
    %cst_5 = arith.constant dense<0.000000e+00> : vector<8x16xf32>
    %16 = tpu.matmul %15, %0, %cst_5 {dimension_numbers = #tpu.dot_dimension_numbers<[1], [0], [0], [1], [0, 0, 1, 1], [], []>} : vector<8x50xbf16>, vector<50x16xbf16>, vector<8x16xf32> -> vector<8x16xf32>
    %17 = tpu.concatenate %8, %16 in 1 : vector<8x16xf32>, vector<8x16xf32> -> vector<8x32xf32>
    %18 = arith.truncf %17 : vector<8x32xf32> to vector<8x32xbf16>
    %c0_6 = arith.constant 0 : index
    %c0_7 = arith.constant 0 : index
    %19 = vector.load %arg3[%c0_6, %c0_7] : memref<32x256xbf16, #tpu.memory_space<vmem>>, vector<32x256xbf16>
    %c0_8 = arith.constant 0 : index
    %c0_9 = arith.constant 0 : index
    %20 = vector.load %arg4[%c0_8, %c0_9] : memref<64x256xbf16, #tpu.memory_space<vmem>>, vector<64x256xbf16>
    %c0_10 = arith.constant 0 : index
    %c0_11 = arith.constant 0 : index
    %21 = vector.load %arg5[%c0_10, %c0_11] : memref<1x256xf32, #tpu.memory_space<vmem>>, vector<1x256xf32>
    %cst_12 = arith.constant dense<0.000000e+00> : vector<8x256xf32>
    %22 = tpu.matmul %18, %19, %cst_12 {dimension_numbers = #tpu.dot_dimension_numbers<[1], [0], [0], [1], [0, 0, 1, 1], [], []>} : vector<8x32xbf16>, vector<32x256xbf16>, vector<8x256xf32> -> vector<8x256xf32>
    %23 = vector.broadcast %21 : vector<1x256xf32> to vector<8x256xf32>
    %24 = arith.addf %22, %23 : vector<8x256xf32>
    %cst_13 = arith.constant 0.000000e+00 : f32
    %25 = vector.broadcast %cst_13 : f32 to vector<2x64xf32>
    %cst_14 = arith.constant 0.000000e+00 : f32
    %26 = vector.broadcast %cst_14 : f32 to vector<2x64xf32>
    %27 = vector.extract_strided_slice %24 {offsets = [0, 0], sizes = [2, 256], strides = [1, 1]} : vector<8x256xf32> to vector<2x256xf32>
    %28 = arith.truncf %25 : vector<2x64xf32> to vector<2x64xbf16>
    %cst_15 = arith.constant dense<0.000000e+00> : vector<2x256xf32>
    %29 = tpu.matmul %28, %20, %cst_15 {dimension_numbers = #tpu.dot_dimension_numbers<[1], [0], [0], [1], [0, 0, 1, 1], [], []>} : vector<2x64xbf16>, vector<64x256xbf16>, vector<2x256xf32> -> vector<2x256xf32>
    %30 = arith.addf %27, %29 : vector<2x256xf32>
    %31 = arith.negf %30 : vector<2x256xf32>
    %32 = math.exp %31 : vector<2x256xf32>
    %cst_16 = arith.constant 1.000000e+00 : f32
    %33 = vector.broadcast %cst_16 : f32 to vector<2x256xf32>
    %34 = arith.addf %33, %32 : vector<2x256xf32>
    %35 = arith.divf %33, %34 : vector<2x256xf32>
    %36 = vector.extract_strided_slice %35 {offsets = [0, 0], sizes = [2, 64], strides = [1, 1]} : vector<2x256xf32> to vector<2x64xf32>
    %37 = vector.extract_strided_slice %35 {offsets = [0, 64], sizes = [2, 64], strides = [1, 1]} : vector<2x256xf32> to vector<2x64xf32>
    %38 = vector.extract_strided_slice %35 {offsets = [0, 128], sizes = [2, 64], strides = [1, 1]} : vector<2x256xf32> to vector<2x64xf32>
    %cst_17 = arith.constant 2.000000e+00 : f32
    %39 = vector.broadcast %cst_17 : f32 to vector<2x64xf32>
    %40 = arith.mulf %39, %38 : vector<2x64xf32>
    %cst_18 = arith.constant 1.000000e+00 : f32
    %41 = vector.broadcast %cst_18 : f32 to vector<2x64xf32>
    %42 = arith.subf %40, %41 : vector<2x64xf32>
    %43 = vector.extract_strided_slice %35 {offsets = [0, 192], sizes = [2, 64], strides = [1, 1]} : vector<2x256xf32> to vector<2x64xf32>
    %44 = arith.mulf %37, %26 : vector<2x64xf32>
    %45 = arith.mulf %36, %42 : vector<2x64xf32>
    %46 = arith.addf %44, %45 : vector<2x64xf32>
    %47 = math.tanh %46 : vector<2x64xf32>
    %48 = arith.mulf %43, %47 : vector<2x64xf32>
    %c0_19 = arith.constant 0 : index
    %c0_20 = arith.constant 0 : index
    %49 = vector.load %arg18[%c0_19, %c0_20] : memref<8x64xf32, #tpu.memory_space<vmem>>, vector<2x64xf32>
    tpu.vector_store %arg18[%c0_19, %c0_20], %48 {strides = array<i32>} : memref<8x64xf32, #tpu.memory_space<vmem>>, vector<2x64xf32>,
    %50 = vector.extract_strided_slice %24 {offsets = [2, 0], sizes = [2, 256], strides = [1, 1]} : vector<8x256xf32> to vector<2x256xf32>
    %51 = arith.truncf %48 : vector<2x64xf32> to vector<2x64xbf16>
    %cst_21 = arith.constant dense<0.000000e+00> : vector<2x256xf32>
    %52 = tpu.matmul %51, %20, %cst_21 {dimension_numbers = #tpu.dot_dimension_numbers<[1], [0], [0], [1], [0, 0, 1, 1], [], []>} : vector<2x64xbf16>, vector<64x256xbf16>, vector<2x256xf32> -> vector<2x256xf32>
    %53 = arith.addf %50, %52 : vector<2x256xf32>
    %54 = arith.negf %53 : vector<2x256xf32>
    %55 = math.exp %54 : vector<2x256xf32>
    %cst_22 = arith.constant 1.000000e+00 : f32
    %56 = vector.broadcast %cst_22 : f32 to vector<2x256xf32>
    %57 = arith.addf %56, %55 : vector<2x256xf32>
    %58 = arith.divf %56, %57 : vector<2x256xf32>
    %59 = vector.extract_strided_slice %58 {offsets = [0, 0], sizes = [2, 64], strides = [1, 1]} : vector<2x256xf32> to vector<2x64xf32>
    %60 = vector.extract_strided_slice %58 {offsets = [0, 64], sizes = [2, 64], strides = [1, 1]} : vector<2x256xf32> to vector<2x64xf32>
    %61 = vector.extract_strided_slice %58 {offsets = [0, 128], sizes = [2, 64], strides = [1, 1]} : vector<2x256xf32> to vector<2x64xf32>
    %cst_23 = arith.constant 2.000000e+00 : f32
    %62 = vector.broadcast %cst_23 : f32 to vector<2x64xf32>
    %63 = arith.mulf %62, %61 : vector<2x64xf32>
    %cst_24 = arith.constant 1.000000e+00 : f32
    %64 = vector.broadcast %cst_24 : f32 to vector<2x64xf32>
    %65 = arith.subf %63, %64 : vector<2x64xf32>
    %66 = vector.extract_strided_slice %58 {offsets = [0, 192], sizes = [2, 64], strides = [1, 1]} : vector<2x256xf32> to vector<2x64xf32>
    %67 = arith.mulf %60, %46 : vector<2x64xf32>
    %68 = arith.mulf %59, %65 : vector<2x64xf32>
    %69 = arith.addf %67, %68 : vector<2x64xf32>
    %70 = math.tanh %69 : vector<2x64xf32>
    %71 = arith.mulf %66, %70 : vector<2x64xf32>
    %c2 = arith.constant 2 : index
    %c0_25 = arith.constant 0 : index
    %72 = vector.load %arg18[%c2, %c0_25] : memref<8x64xf32, #tpu.memory_space<vmem>>, vector<2x64xf32>
    tpu.vector_store %arg18[%c2, %c0_25], %71 {strides = array<i32>} : memref<8x64xf32, #tpu.memory_space<vmem>>, vector<2x64xf32>,
    %73 = vector.extract_strided_slice %24 {offsets = [4, 0], sizes = [2, 256], strides = [1, 1]} : vector<8x256xf32> to vector<2x256xf32>
    %74 = arith.truncf %71 : vector<2x64xf32> to vector<2x64xbf16>
    %cst_26 = arith.constant dense<0.000000e+00> : vector<2x256xf32>
    %75 = tpu.matmul %74, %20, %cst_26 {dimension_numbers = #tpu.dot_dimension_numbers<[1], [0], [0], [1], [0, 0, 1, 1], [], []>} : vector<2x64xbf16>, vector<64x256xbf16>, vector<2x256xf32> -> vector<2x256xf32>
    %76 = arith.addf %73, %75 : vector<2x256xf32>
    %77 = arith.negf %76 : vector<2x256xf32>
    %78 = math.exp %77 : vector<2x256xf32>
    %cst_27 = arith.constant 1.000000e+00 : f32
    %79 = vector.broadcast %cst_27 : f32 to vector<2x256xf32>
    %80 = arith.addf %79, %78 : vector<2x256xf32>
    %81 = arith.divf %79, %80 : vector<2x256xf32>
    %82 = vector.extract_strided_slice %81 {offsets = [0, 0], sizes = [2, 64], strides = [1, 1]} : vector<2x256xf32> to vector<2x64xf32>
    %83 = vector.extract_strided_slice %81 {offsets = [0, 64], sizes = [2, 64], strides = [1, 1]} : vector<2x256xf32> to vector<2x64xf32>
    %84 = vector.extract_strided_slice %81 {offsets = [0, 128], sizes = [2, 64], strides = [1, 1]} : vector<2x256xf32> to vector<2x64xf32>
    %cst_28 = arith.constant 2.000000e+00 : f32
    %85 = vector.broadcast %cst_28 : f32 to vector<2x64xf32>
    %86 = arith.mulf %85, %84 : vector<2x64xf32>
    %cst_29 = arith.constant 1.000000e+00 : f32
    %87 = vector.broadcast %cst_29 : f32 to vector<2x64xf32>
    %88 = arith.subf %86, %87 : vector<2x64xf32>
    %89 = vector.extract_strided_slice %81 {offsets = [0, 192], sizes = [2, 64], strides = [1, 1]} : vector<2x256xf32> to vector<2x64xf32>
    %90 = arith.mulf %83, %69 : vector<2x64xf32>
    %91 = arith.mulf %82, %88 : vector<2x64xf32>
    %92 = arith.addf %90, %91 : vector<2x64xf32>
    %93 = math.tanh %92 : vector<2x64xf32>
    %94 = arith.mulf %89, %93 : vector<2x64xf32>
    %c4 = arith.constant 4 : index
    %c0_30 = arith.constant 0 : index
    %95 = vector.load %arg18[%c4, %c0_30] : memref<8x64xf32, #tpu.memory_space<vmem>>, vector<2x64xf32>
    tpu.vector_store %arg18[%c4, %c0_30], %94 {strides = array<i32>} : memref<8x64xf32, #tpu.memory_space<vmem>>, vector<2x64xf32>,
    %96 = vector.extract_strided_slice %24 {offsets = [6, 0], sizes = [2, 256], strides = [1, 1]} : vector<8x256xf32> to vector<2x256xf32>
    %97 = arith.truncf %94 : vector<2x64xf32> to vector<2x64xbf16>
    %cst_31 = arith.constant dense<0.000000e+00> : vector<2x256xf32>
    %98 = tpu.matmul %97, %20, %cst_31 {dimension_numbers = #tpu.dot_dimension_numbers<[1], [0], [0], [1], [0, 0, 1, 1], [], []>} : vector<2x64xbf16>, vector<64x256xbf16>, vector<2x256xf32> -> vector<2x256xf32>
    %99 = arith.addf %96, %98 : vector<2x256xf32>
    %100 = arith.negf %99 : vector<2x256xf32>
    %101 = math.exp %100 : vector<2x256xf32>
    %cst_32 = arith.constant 1.000000e+00 : f32
    %102 = vector.broadcast %cst_32 : f32 to vector<2x256xf32>
    %103 = arith.addf %102, %101 : vector<2x256xf32>
    %104 = arith.divf %102, %103 : vector<2x256xf32>
    %105 = vector.extract_strided_slice %104 {offsets = [0, 0], sizes = [2, 64], strides = [1, 1]} : vector<2x256xf32> to vector<2x64xf32>
    %106 = vector.extract_strided_slice %104 {offsets = [0, 64], sizes = [2, 64], strides = [1, 1]} : vector<2x256xf32> to vector<2x64xf32>
    %107 = vector.extract_strided_slice %104 {offsets = [0, 128], sizes = [2, 64], strides = [1, 1]} : vector<2x256xf32> to vector<2x64xf32>
    %cst_33 = arith.constant 2.000000e+00 : f32
    %108 = vector.broadcast %cst_33 : f32 to vector<2x64xf32>
    %109 = arith.mulf %108, %107 : vector<2x64xf32>
    %cst_34 = arith.constant 1.000000e+00 : f32
    %110 = vector.broadcast %cst_34 : f32 to vector<2x64xf32>
    %111 = arith.subf %109, %110 : vector<2x64xf32>
    %112 = vector.extract_strided_slice %104 {offsets = [0, 192], sizes = [2, 64], strides = [1, 1]} : vector<2x256xf32> to vector<2x64xf32>
    %113 = arith.mulf %106, %92 : vector<2x64xf32>
    %114 = arith.mulf %105, %111 : vector<2x64xf32>
    %115 = arith.addf %113, %114 : vector<2x64xf32>
    %116 = math.tanh %115 : vector<2x64xf32>
    %117 = arith.mulf %112, %116 : vector<2x64xf32>
    %c6 = arith.constant 6 : index
    %c0_35 = arith.constant 0 : index
    %118 = vector.load %arg18[%c6, %c0_35] : memref<8x64xf32, #tpu.memory_space<vmem>>, vector<2x64xf32>
    tpu.vector_store %arg18[%c6, %c0_35], %117 {strides = array<i32>} : memref<8x64xf32, #tpu.memory_space<vmem>>, vector<2x64xf32>,
    %c0_36 = arith.constant 0 : index
    %c0_37 = arith.constant 0 : index
    %119 = vector.load %arg18[%c0_36, %c0_37] : memref<8x64xf32, #tpu.memory_space<vmem>>, vector<8x64xf32>
    %120 = arith.truncf %119 : vector<8x64xf32> to vector<8x64xbf16>
    %c0_38 = arith.constant 0 : index
    %c0_39 = arith.constant 0 : index
    %121 = vector.load %arg6[%c0_38, %c0_39] : memref<64x256xbf16, #tpu.memory_space<vmem>>, vector<64x256xbf16>
    %c0_40 = arith.constant 0 : index
    %c0_41 = arith.constant 0 : index
    %122 = vector.load %arg7[%c0_40, %c0_41] : memref<64x256xbf16, #tpu.memory_space<vmem>>, vector<64x256xbf16>
    %c0_42 = arith.constant 0 : index
    %c0_43 = arith.constant 0 : index
    %123 = vector.load %arg8[%c0_42, %c0_43] : memref<1x256xf32, #tpu.memory_space<vmem>>, vector<1x256xf32>
    %cst_44 = arith.constant dense<0.000000e+00> : vector<8x256xf32>
    %124 = tpu.matmul %120, %121, %cst_44 {dimension_numbers = #tpu.dot_dimension_numbers<[1], [0], [0], [1], [0, 0, 1, 1], [], []>} : vector<8x64xbf16>, vector<64x256xbf16>, vector<8x256xf32> -> vector<8x256xf32>
    %125 = vector.broadcast %123 : vector<1x256xf32> to vector<8x256xf32>
    %126 = arith.addf %124, %125 : vector<8x256xf32>
    %cst_45 = arith.constant 0.000000e+00 : f32
    %127 = vector.broadcast %cst_45 : f32 to vector<2x64xf32>
    %cst_46 = arith.constant 0.000000e+00 : f32
    %128 = vector.broadcast %cst_46 : f32 to vector<2x64xf32>
    %129 = vector.extract_strided_slice %126 {offsets = [0, 0], sizes = [2, 256], strides = [1, 1]} : vector<8x256xf32> to vector<2x256xf32>
    %130 = arith.truncf %127 : vector<2x64xf32> to vector<2x64xbf16>
    %cst_47 = arith.constant dense<0.000000e+00> : vector<2x256xf32>
    %131 = tpu.matmul %130, %122, %cst_47 {dimension_numbers = #tpu.dot_dimension_numbers<[1], [0], [0], [1], [0, 0, 1, 1], [], []>} : vector<2x64xbf16>, vector<64x256xbf16>, vector<2x256xf32> -> vector<2x256xf32>
    %132 = arith.addf %129, %131 : vector<2x256xf32>
    %133 = arith.negf %132 : vector<2x256xf32>
    %134 = math.exp %133 : vector<2x256xf32>
    %cst_48 = arith.constant 1.000000e+00 : f32
    %135 = vector.broadcast %cst_48 : f32 to vector<2x256xf32>
    %136 = arith.addf %135, %134 : vector<2x256xf32>
    %137 = arith.divf %135, %136 : vector<2x256xf32>
    %138 = vector.extract_strided_slice %137 {offsets = [0, 0], sizes = [2, 64], strides = [1, 1]} : vector<2x256xf32> to vector<2x64xf32>
    %139 = vector.extract_strided_slice %137 {offsets = [0, 64], sizes = [2, 64], strides = [1, 1]} : vector<2x256xf32> to vector<2x64xf32>
    %140 = vector.extract_strided_slice %137 {offsets = [0, 128], sizes = [2, 64], strides = [1, 1]} : vector<2x256xf32> to vector<2x64xf32>
    %cst_49 = arith.constant 2.000000e+00 : f32
    %141 = vector.broadcast %cst_49 : f32 to vector<2x64xf32>
    %142 = arith.mulf %141, %140 : vector<2x64xf32>
    %cst_50 = arith.constant 1.000000e+00 : f32
    %143 = vector.broadcast %cst_50 : f32 to vector<2x64xf32>
    %144 = arith.subf %142, %143 : vector<2x64xf32>
    %145 = vector.extract_strided_slice %137 {offsets = [0, 192], sizes = [2, 64], strides = [1, 1]} : vector<2x256xf32> to vector<2x64xf32>
    %146 = arith.mulf %139, %128 : vector<2x64xf32>
    %147 = arith.mulf %138, %144 : vector<2x64xf32>
    %148 = arith.addf %146, %147 : vector<2x64xf32>
    %149 = math.tanh %148 : vector<2x64xf32>
    %150 = arith.mulf %145, %149 : vector<2x64xf32>
    %c0_51 = arith.constant 0 : index
    %c0_52 = arith.constant 0 : index
    %151 = vector.load %arg18[%c0_51, %c0_52] : memref<8x64xf32, #tpu.memory_space<vmem>>, vector<2x64xf32>
    tpu.vector_store %arg18[%c0_51, %c0_52], %150 {strides = array<i32>} : memref<8x64xf32, #tpu.memory_space<vmem>>, vector<2x64xf32>,
    %152 = vector.extract_strided_slice %126 {offsets = [2, 0], sizes = [2, 256], strides = [1, 1]} : vector<8x256xf32> to vector<2x256xf32>
    %153 = arith.truncf %150 : vector<2x64xf32> to vector<2x64xbf16>
    %cst_53 = arith.constant dense<0.000000e+00> : vector<2x256xf32>
    %154 = tpu.matmul %153, %122, %cst_53 {dimension_numbers = #tpu.dot_dimension_numbers<[1], [0], [0], [1], [0, 0, 1, 1], [], []>} : vector<2x64xbf16>, vector<64x256xbf16>, vector<2x256xf32> -> vector<2x256xf32>
    %155 = arith.addf %152, %154 : vector<2x256xf32>
    %156 = arith.negf %155 : vector<2x256xf32>
    %157 = math.exp %156 : vector<2x256xf32>
    %cst_54 = arith.constant 1.000000e+00 : f32
    %158 = vector.broadcast %cst_54 : f32 to vector<2x256xf32>
    %159 = arith.addf %158, %157 : vector<2x256xf32>
    %160 = arith.divf %158, %159 : vector<2x256xf32>
    %161 = vector.extract_strided_slice %160 {offsets = [0, 0], sizes = [2, 64], strides = [1, 1]} : vector<2x256xf32> to vector<2x64xf32>
    %162 = vector.extract_strided_slice %160 {offsets = [0, 64], sizes = [2, 64], strides = [1, 1]} : vector<2x256xf32> to vector<2x64xf32>
    %163 = vector.extract_strided_slice %160 {offsets = [0, 128], sizes = [2, 64], strides = [1, 1]} : vector<2x256xf32> to vector<2x64xf32>
    %cst_55 = arith.constant 2.000000e+00 : f32
    %164 = vector.broadcast %cst_55 : f32 to vector<2x64xf32>
    %165 = arith.mulf %164, %163 : vector<2x64xf32>
    %cst_56 = arith.constant 1.000000e+00 : f32
    %166 = vector.broadcast %cst_56 : f32 to vector<2x64xf32>
    %167 = arith.subf %165, %166 : vector<2x64xf32>
    %168 = vector.extract_strided_slice %160 {offsets = [0, 192], sizes = [2, 64], strides = [1, 1]} : vector<2x256xf32> to vector<2x64xf32>
    %169 = arith.mulf %162, %148 : vector<2x64xf32>
    %170 = arith.mulf %161, %167 : vector<2x64xf32>
    %171 = arith.addf %169, %170 : vector<2x64xf32>
    %172 = math.tanh %171 : vector<2x64xf32>
    %173 = arith.mulf %168, %172 : vector<2x64xf32>
    %c2_57 = arith.constant 2 : index
    %c0_58 = arith.constant 0 : index
    %174 = vector.load %arg18[%c2_57, %c0_58] : memref<8x64xf32, #tpu.memory_space<vmem>>, vector<2x64xf32>
    tpu.vector_store %arg18[%c2_57, %c0_58], %173 {strides = array<i32>} : memref<8x64xf32, #tpu.memory_space<vmem>>, vector<2x64xf32>,
    %175 = vector.extract_strided_slice %126 {offsets = [4, 0], sizes = [2, 256], strides = [1, 1]} : vector<8x256xf32> to vector<2x256xf32>
    %176 = arith.truncf %173 : vector<2x64xf32> to vector<2x64xbf16>
    %cst_59 = arith.constant dense<0.000000e+00> : vector<2x256xf32>
    %177 = tpu.matmul %176, %122, %cst_59 {dimension_numbers = #tpu.dot_dimension_numbers<[1], [0], [0], [1], [0, 0, 1, 1], [], []>} : vector<2x64xbf16>, vector<64x256xbf16>, vector<2x256xf32> -> vector<2x256xf32>
    %178 = arith.addf %175, %177 : vector<2x256xf32>
    %179 = arith.negf %178 : vector<2x256xf32>
    %180 = math.exp %179 : vector<2x256xf32>
    %cst_60 = arith.constant 1.000000e+00 : f32
    %181 = vector.broadcast %cst_60 : f32 to vector<2x256xf32>
    %182 = arith.addf %181, %180 : vector<2x256xf32>
    %183 = arith.divf %181, %182 : vector<2x256xf32>
    %184 = vector.extract_strided_slice %183 {offsets = [0, 0], sizes = [2, 64], strides = [1, 1]} : vector<2x256xf32> to vector<2x64xf32>
    %185 = vector.extract_strided_slice %183 {offsets = [0, 64], sizes = [2, 64], strides = [1, 1]} : vector<2x256xf32> to vector<2x64xf32>
    %186 = vector.extract_strided_slice %183 {offsets = [0, 128], sizes = [2, 64], strides = [1, 1]} : vector<2x256xf32> to vector<2x64xf32>
    %cst_61 = arith.constant 2.000000e+00 : f32
    %187 = vector.broadcast %cst_61 : f32 to vector<2x64xf32>
    %188 = arith.mulf %187, %186 : vector<2x64xf32>
    %cst_62 = arith.constant 1.000000e+00 : f32
    %189 = vector.broadcast %cst_62 : f32 to vector<2x64xf32>
    %190 = arith.subf %188, %189 : vector<2x64xf32>
    %191 = vector.extract_strided_slice %183 {offsets = [0, 192], sizes = [2, 64], strides = [1, 1]} : vector<2x256xf32> to vector<2x64xf32>
    %192 = arith.mulf %185, %171 : vector<2x64xf32>
    %193 = arith.mulf %184, %190 : vector<2x64xf32>
    %194 = arith.addf %192, %193 : vector<2x64xf32>
    %195 = math.tanh %194 : vector<2x64xf32>
    %196 = arith.mulf %191, %195 : vector<2x64xf32>
    %c4_63 = arith.constant 4 : index
    %c0_64 = arith.constant 0 : index
    %197 = vector.load %arg18[%c4_63, %c0_64] : memref<8x64xf32, #tpu.memory_space<vmem>>, vector<2x64xf32>
    tpu.vector_store %arg18[%c4_63, %c0_64], %196 {strides = array<i32>} : memref<8x64xf32, #tpu.memory_space<vmem>>, vector<2x64xf32>,
    %198 = vector.extract_strided_slice %126 {offsets = [6, 0], sizes = [2, 256], strides = [1, 1]} : vector<8x256xf32> to vector<2x256xf32>
    %199 = arith.truncf %196 : vector<2x64xf32> to vector<2x64xbf16>
    %cst_65 = arith.constant dense<0.000000e+00> : vector<2x256xf32>
    %200 = tpu.matmul %199, %122, %cst_65 {dimension_numbers = #tpu.dot_dimension_numbers<[1], [0], [0], [1], [0, 0, 1, 1], [], []>} : vector<2x64xbf16>, vector<64x256xbf16>, vector<2x256xf32> -> vector<2x256xf32>
    %201 = arith.addf %198, %200 : vector<2x256xf32>
    %202 = arith.negf %201 : vector<2x256xf32>
    %203 = math.exp %202 : vector<2x256xf32>
    %cst_66 = arith.constant 1.000000e+00 : f32
    %204 = vector.broadcast %cst_66 : f32 to vector<2x256xf32>
    %205 = arith.addf %204, %203 : vector<2x256xf32>
    %206 = arith.divf %204, %205 : vector<2x256xf32>
    %207 = vector.extract_strided_slice %206 {offsets = [0, 0], sizes = [2, 64], strides = [1, 1]} : vector<2x256xf32> to vector<2x64xf32>
    %208 = vector.extract_strided_slice %206 {offsets = [0, 64], sizes = [2, 64], strides = [1, 1]} : vector<2x256xf32> to vector<2x64xf32>
    %209 = vector.extract_strided_slice %206 {offsets = [0, 128], sizes = [2, 64], strides = [1, 1]} : vector<2x256xf32> to vector<2x64xf32>
    %cst_67 = arith.constant 2.000000e+00 : f32
    %210 = vector.broadcast %cst_67 : f32 to vector<2x64xf32>
    %211 = arith.mulf %210, %209 : vector<2x64xf32>
    %cst_68 = arith.constant 1.000000e+00 : f32
    %212 = vector.broadcast %cst_68 : f32 to vector<2x64xf32>
    %213 = arith.subf %211, %212 : vector<2x64xf32>
    %214 = vector.extract_strided_slice %206 {offsets = [0, 192], sizes = [2, 64], strides = [1, 1]} : vector<2x256xf32> to vector<2x64xf32>
    %215 = arith.mulf %208, %194 : vector<2x64xf32>
    %216 = arith.mulf %207, %213 : vector<2x64xf32>
    %217 = arith.addf %215, %216 : vector<2x64xf32>
    %218 = math.tanh %217 : vector<2x64xf32>
    %219 = arith.mulf %214, %218 : vector<2x64xf32>
    %c6_69 = arith.constant 6 : index
    %c0_70 = arith.constant 0 : index
    %220 = vector.load %arg18[%c6_69, %c0_70] : memref<8x64xf32, #tpu.memory_space<vmem>>, vector<2x64xf32>
    tpu.vector_store %arg18[%c6_69, %c0_70], %219 {strides = array<i32>} : memref<8x64xf32, #tpu.memory_space<vmem>>, vector<2x64xf32>,
    %c0_71 = arith.constant 0 : index
    %c0_72 = arith.constant 0 : index
    %221 = vector.load %arg18[%c0_71, %c0_72] : memref<8x64xf32, #tpu.memory_space<vmem>>, vector<8x64xf32>
    %222 = arith.truncf %221 : vector<8x64xf32> to vector<8x64xbf16>
    %c0_73 = arith.constant 0 : index
    %c0_74 = arith.constant 0 : index
    %223 = vector.load %arg9[%c0_73, %c0_74] : memref<64x256xbf16, #tpu.memory_space<vmem>>, vector<64x256xbf16>
    %c0_75 = arith.constant 0 : index
    %c0_76 = arith.constant 0 : index
    %224 = vector.load %arg10[%c0_75, %c0_76] : memref<64x256xbf16, #tpu.memory_space<vmem>>, vector<64x256xbf16>
    %c0_77 = arith.constant 0 : index
    %c0_78 = arith.constant 0 : index
    %225 = vector.load %arg11[%c0_77, %c0_78] : memref<1x256xf32, #tpu.memory_space<vmem>>, vector<1x256xf32>
    %cst_79 = arith.constant dense<0.000000e+00> : vector<8x256xf32>
    %226 = tpu.matmul %222, %223, %cst_79 {dimension_numbers = #tpu.dot_dimension_numbers<[1], [0], [0], [1], [0, 0, 1, 1], [], []>} : vector<8x64xbf16>, vector<64x256xbf16>, vector<8x256xf32> -> vector<8x256xf32>
    %227 = vector.broadcast %225 : vector<1x256xf32> to vector<8x256xf32>
    %228 = arith.addf %226, %227 : vector<8x256xf32>
    %cst_80 = arith.constant 0.000000e+00 : f32
    %229 = vector.broadcast %cst_80 : f32 to vector<2x64xf32>
    %cst_81 = arith.constant 0.000000e+00 : f32
    %230 = vector.broadcast %cst_81 : f32 to vector<2x64xf32>
    %231 = vector.extract_strided_slice %228 {offsets = [0, 0], sizes = [2, 256], strides = [1, 1]} : vector<8x256xf32> to vector<2x256xf32>
    %232 = arith.truncf %229 : vector<2x64xf32> to vector<2x64xbf16>
    %cst_82 = arith.constant dense<0.000000e+00> : vector<2x256xf32>
    %233 = tpu.matmul %232, %224, %cst_82 {dimension_numbers = #tpu.dot_dimension_numbers<[1], [0], [0], [1], [0, 0, 1, 1], [], []>} : vector<2x64xbf16>, vector<64x256xbf16>, vector<2x256xf32> -> vector<2x256xf32>
    %234 = arith.addf %231, %233 : vector<2x256xf32>
    %235 = arith.negf %234 : vector<2x256xf32>
    %236 = math.exp %235 : vector<2x256xf32>
    %cst_83 = arith.constant 1.000000e+00 : f32
    %237 = vector.broadcast %cst_83 : f32 to vector<2x256xf32>
    %238 = arith.addf %237, %236 : vector<2x256xf32>
    %239 = arith.divf %237, %238 : vector<2x256xf32>
    %240 = vector.extract_strided_slice %239 {offsets = [0, 0], sizes = [2, 64], strides = [1, 1]} : vector<2x256xf32> to vector<2x64xf32>
    %241 = vector.extract_strided_slice %239 {offsets = [0, 64], sizes = [2, 64], strides = [1, 1]} : vector<2x256xf32> to vector<2x64xf32>
    %242 = vector.extract_strided_slice %239 {offsets = [0, 128], sizes = [2, 64], strides = [1, 1]} : vector<2x256xf32> to vector<2x64xf32>
    %cst_84 = arith.constant 2.000000e+00 : f32
    %243 = vector.broadcast %cst_84 : f32 to vector<2x64xf32>
    %244 = arith.mulf %243, %242 : vector<2x64xf32>
    %cst_85 = arith.constant 1.000000e+00 : f32
    %245 = vector.broadcast %cst_85 : f32 to vector<2x64xf32>
    %246 = arith.subf %244, %245 : vector<2x64xf32>
    %247 = vector.extract_strided_slice %239 {offsets = [0, 192], sizes = [2, 64], strides = [1, 1]} : vector<2x256xf32> to vector<2x64xf32>
    %248 = arith.mulf %241, %230 : vector<2x64xf32>
    %249 = arith.mulf %240, %246 : vector<2x64xf32>
    %250 = arith.addf %248, %249 : vector<2x64xf32>
    %251 = math.tanh %250 : vector<2x64xf32>
    %252 = arith.mulf %247, %251 : vector<2x64xf32>
    %c0_86 = arith.constant 0 : index
    %c0_87 = arith.constant 0 : index
    %253 = vector.load %arg18[%c0_86, %c0_87] : memref<8x64xf32, #tpu.memory_space<vmem>>, vector<2x64xf32>
    tpu.vector_store %arg18[%c0_86, %c0_87], %252 {strides = array<i32>} : memref<8x64xf32, #tpu.memory_space<vmem>>, vector<2x64xf32>,
    %254 = vector.extract_strided_slice %228 {offsets = [2, 0], sizes = [2, 256], strides = [1, 1]} : vector<8x256xf32> to vector<2x256xf32>
    %255 = arith.truncf %252 : vector<2x64xf32> to vector<2x64xbf16>
    %cst_88 = arith.constant dense<0.000000e+00> : vector<2x256xf32>
    %256 = tpu.matmul %255, %224, %cst_88 {dimension_numbers = #tpu.dot_dimension_numbers<[1], [0], [0], [1], [0, 0, 1, 1], [], []>} : vector<2x64xbf16>, vector<64x256xbf16>, vector<2x256xf32> -> vector<2x256xf32>
    %257 = arith.addf %254, %256 : vector<2x256xf32>
    %258 = arith.negf %257 : vector<2x256xf32>
    %259 = math.exp %258 : vector<2x256xf32>
    %cst_89 = arith.constant 1.000000e+00 : f32
    %260 = vector.broadcast %cst_89 : f32 to vector<2x256xf32>
    %261 = arith.addf %260, %259 : vector<2x256xf32>
    %262 = arith.divf %260, %261 : vector<2x256xf32>
    %263 = vector.extract_strided_slice %262 {offsets = [0, 0], sizes = [2, 64], strides = [1, 1]} : vector<2x256xf32> to vector<2x64xf32>
    %264 = vector.extract_strided_slice %262 {offsets = [0, 64], sizes = [2, 64], strides = [1, 1]} : vector<2x256xf32> to vector<2x64xf32>
    %265 = vector.extract_strided_slice %262 {offsets = [0, 128], sizes = [2, 64], strides = [1, 1]} : vector<2x256xf32> to vector<2x64xf32>
    %cst_90 = arith.constant 2.000000e+00 : f32
    %266 = vector.broadcast %cst_90 : f32 to vector<2x64xf32>
    %267 = arith.mulf %266, %265 : vector<2x64xf32>
    %cst_91 = arith.constant 1.000000e+00 : f32
    %268 = vector.broadcast %cst_91 : f32 to vector<2x64xf32>
    %269 = arith.subf %267, %268 : vector<2x64xf32>
    %270 = vector.extract_strided_slice %262 {offsets = [0, 192], sizes = [2, 64], strides = [1, 1]} : vector<2x256xf32> to vector<2x64xf32>
    %271 = arith.mulf %264, %250 : vector<2x64xf32>
    %272 = arith.mulf %263, %269 : vector<2x64xf32>
    %273 = arith.addf %271, %272 : vector<2x64xf32>
    %274 = math.tanh %273 : vector<2x64xf32>
    %275 = arith.mulf %270, %274 : vector<2x64xf32>
    %c2_92 = arith.constant 2 : index
    %c0_93 = arith.constant 0 : index
    %276 = vector.load %arg18[%c2_92, %c0_93] : memref<8x64xf32, #tpu.memory_space<vmem>>, vector<2x64xf32>
    tpu.vector_store %arg18[%c2_92, %c0_93], %275 {strides = array<i32>} : memref<8x64xf32, #tpu.memory_space<vmem>>, vector<2x64xf32>,
    %277 = vector.extract_strided_slice %228 {offsets = [4, 0], sizes = [2, 256], strides = [1, 1]} : vector<8x256xf32> to vector<2x256xf32>
    %278 = arith.truncf %275 : vector<2x64xf32> to vector<2x64xbf16>
    %cst_94 = arith.constant dense<0.000000e+00> : vector<2x256xf32>
    %279 = tpu.matmul %278, %224, %cst_94 {dimension_numbers = #tpu.dot_dimension_numbers<[1], [0], [0], [1], [0, 0, 1, 1], [], []>} : vector<2x64xbf16>, vector<64x256xbf16>, vector<2x256xf32> -> vector<2x256xf32>
    %280 = arith.addf %277, %279 : vector<2x256xf32>
    %281 = arith.negf %280 : vector<2x256xf32>
    %282 = math.exp %281 : vector<2x256xf32>
    %cst_95 = arith.constant 1.000000e+00 : f32
    %283 = vector.broadcast %cst_95 : f32 to vector<2x256xf32>
    %284 = arith.addf %283, %282 : vector<2x256xf32>
    %285 = arith.divf %283, %284 : vector<2x256xf32>
    %286 = vector.extract_strided_slice %285 {offsets = [0, 0], sizes = [2, 64], strides = [1, 1]} : vector<2x256xf32> to vector<2x64xf32>
    %287 = vector.extract_strided_slice %285 {offsets = [0, 64], sizes = [2, 64], strides = [1, 1]} : vector<2x256xf32> to vector<2x64xf32>
    %288 = vector.extract_strided_slice %285 {offsets = [0, 128], sizes = [2, 64], strides = [1, 1]} : vector<2x256xf32> to vector<2x64xf32>
    %cst_96 = arith.constant 2.000000e+00 : f32
    %289 = vector.broadcast %cst_96 : f32 to vector<2x64xf32>
    %290 = arith.mulf %289, %288 : vector<2x64xf32>
    %cst_97 = arith.constant 1.000000e+00 : f32
    %291 = vector.broadcast %cst_97 : f32 to vector<2x64xf32>
    %292 = arith.subf %290, %291 : vector<2x64xf32>
    %293 = vector.extract_strided_slice %285 {offsets = [0, 192], sizes = [2, 64], strides = [1, 1]} : vector<2x256xf32> to vector<2x64xf32>
    %294 = arith.mulf %287, %273 : vector<2x64xf32>
    %295 = arith.mulf %286, %292 : vector<2x64xf32>
    %296 = arith.addf %294, %295 : vector<2x64xf32>
    %297 = math.tanh %296 : vector<2x64xf32>
    %298 = arith.mulf %293, %297 : vector<2x64xf32>
    %c4_98 = arith.constant 4 : index
    %c0_99 = arith.constant 0 : index
    %299 = vector.load %arg18[%c4_98, %c0_99] : memref<8x64xf32, #tpu.memory_space<vmem>>, vector<2x64xf32>
    tpu.vector_store %arg18[%c4_98, %c0_99], %298 {strides = array<i32>} : memref<8x64xf32, #tpu.memory_space<vmem>>, vector<2x64xf32>,
    %300 = vector.extract_strided_slice %228 {offsets = [6, 0], sizes = [2, 256], strides = [1, 1]} : vector<8x256xf32> to vector<2x256xf32>
    %301 = arith.truncf %298 : vector<2x64xf32> to vector<2x64xbf16>
    %cst_100 = arith.constant dense<0.000000e+00> : vector<2x256xf32>
    %302 = tpu.matmul %301, %224, %cst_100 {dimension_numbers = #tpu.dot_dimension_numbers<[1], [0], [0], [1], [0, 0, 1, 1], [], []>} : vector<2x64xbf16>, vector<64x256xbf16>, vector<2x256xf32> -> vector<2x256xf32>
    %303 = arith.addf %300, %302 : vector<2x256xf32>
    %304 = arith.negf %303 : vector<2x256xf32>
    %305 = math.exp %304 : vector<2x256xf32>
    %cst_101 = arith.constant 1.000000e+00 : f32
    %306 = vector.broadcast %cst_101 : f32 to vector<2x256xf32>
    %307 = arith.addf %306, %305 : vector<2x256xf32>
    %308 = arith.divf %306, %307 : vector<2x256xf32>
    %309 = vector.extract_strided_slice %308 {offsets = [0, 0], sizes = [2, 64], strides = [1, 1]} : vector<2x256xf32> to vector<2x64xf32>
    %310 = vector.extract_strided_slice %308 {offsets = [0, 64], sizes = [2, 64], strides = [1, 1]} : vector<2x256xf32> to vector<2x64xf32>
    %311 = vector.extract_strided_slice %308 {offsets = [0, 128], sizes = [2, 64], strides = [1, 1]} : vector<2x256xf32> to vector<2x64xf32>
    %cst_102 = arith.constant 2.000000e+00 : f32
    %312 = vector.broadcast %cst_102 : f32 to vector<2x64xf32>
    %313 = arith.mulf %312, %311 : vector<2x64xf32>
    %cst_103 = arith.constant 1.000000e+00 : f32
    %314 = vector.broadcast %cst_103 : f32 to vector<2x64xf32>
    %315 = arith.subf %313, %314 : vector<2x64xf32>
    %316 = vector.extract_strided_slice %308 {offsets = [0, 192], sizes = [2, 64], strides = [1, 1]} : vector<2x256xf32> to vector<2x64xf32>
    %317 = arith.mulf %310, %296 : vector<2x64xf32>
    %318 = arith.mulf %309, %315 : vector<2x64xf32>
    %319 = arith.addf %317, %318 : vector<2x64xf32>
    %320 = math.tanh %319 : vector<2x64xf32>
    %321 = arith.mulf %316, %320 : vector<2x64xf32>
    %c6_104 = arith.constant 6 : index
    %c0_105 = arith.constant 0 : index
    %322 = vector.load %arg18[%c6_104, %c0_105] : memref<8x64xf32, #tpu.memory_space<vmem>>, vector<2x64xf32>
    tpu.vector_store %arg18[%c6_104, %c0_105], %321 {strides = array<i32>} : memref<8x64xf32, #tpu.memory_space<vmem>>, vector<2x64xf32>,
    %c0_106 = arith.constant 0 : index
    %c0_107 = arith.constant 0 : index
    %323 = vector.load %arg18[%c0_106, %c0_107] : memref<8x64xf32, #tpu.memory_space<vmem>>, vector<8x64xf32>
    %324 = arith.truncf %323 : vector<8x64xf32> to vector<8x64xbf16>
    %c0_108 = arith.constant 0 : index
    %c0_109 = arith.constant 0 : index
    %325 = vector.load %arg12[%c0_108, %c0_109] : memref<64x256xbf16, #tpu.memory_space<vmem>>, vector<64x256xbf16>
    %c0_110 = arith.constant 0 : index
    %c0_111 = arith.constant 0 : index
    %326 = vector.load %arg13[%c0_110, %c0_111] : memref<64x256xbf16, #tpu.memory_space<vmem>>, vector<64x256xbf16>
    %c0_112 = arith.constant 0 : index
    %c0_113 = arith.constant 0 : index
    %327 = vector.load %arg14[%c0_112, %c0_113] : memref<1x256xf32, #tpu.memory_space<vmem>>, vector<1x256xf32>
    %cst_114 = arith.constant dense<0.000000e+00> : vector<8x256xf32>
    %328 = tpu.matmul %324, %325, %cst_114 {dimension_numbers = #tpu.dot_dimension_numbers<[1], [0], [0], [1], [0, 0, 1, 1], [], []>} : vector<8x64xbf16>, vector<64x256xbf16>, vector<8x256xf32> -> vector<8x256xf32>
    %329 = vector.broadcast %327 : vector<1x256xf32> to vector<8x256xf32>
    %330 = arith.addf %328, %329 : vector<8x256xf32>
    %cst_115 = arith.constant 0.000000e+00 : f32
    %331 = vector.broadcast %cst_115 : f32 to vector<2x64xf32>
    %cst_116 = arith.constant 0.000000e+00 : f32
    %332 = vector.broadcast %cst_116 : f32 to vector<2x64xf32>
    %333 = vector.extract_strided_slice %330 {offsets = [0, 0], sizes = [2, 256], strides = [1, 1]} : vector<8x256xf32> to vector<2x256xf32>
    %334 = arith.truncf %331 : vector<2x64xf32> to vector<2x64xbf16>
    %cst_117 = arith.constant dense<0.000000e+00> : vector<2x256xf32>
    %335 = tpu.matmul %334, %326, %cst_117 {dimension_numbers = #tpu.dot_dimension_numbers<[1], [0], [0], [1], [0, 0, 1, 1], [], []>} : vector<2x64xbf16>, vector<64x256xbf16>, vector<2x256xf32> -> vector<2x256xf32>
    %336 = arith.addf %333, %335 : vector<2x256xf32>
    %337 = arith.negf %336 : vector<2x256xf32>
    %338 = math.exp %337 : vector<2x256xf32>
    %cst_118 = arith.constant 1.000000e+00 : f32
    %339 = vector.broadcast %cst_118 : f32 to vector<2x256xf32>
    %340 = arith.addf %339, %338 : vector<2x256xf32>
    %341 = arith.divf %339, %340 : vector<2x256xf32>
    %342 = vector.extract_strided_slice %341 {offsets = [0, 0], sizes = [2, 64], strides = [1, 1]} : vector<2x256xf32> to vector<2x64xf32>
    %343 = vector.extract_strided_slice %341 {offsets = [0, 64], sizes = [2, 64], strides = [1, 1]} : vector<2x256xf32> to vector<2x64xf32>
    %344 = vector.extract_strided_slice %341 {offsets = [0, 128], sizes = [2, 64], strides = [1, 1]} : vector<2x256xf32> to vector<2x64xf32>
    %cst_119 = arith.constant 2.000000e+00 : f32
    %345 = vector.broadcast %cst_119 : f32 to vector<2x64xf32>
    %346 = arith.mulf %345, %344 : vector<2x64xf32>
    %cst_120 = arith.constant 1.000000e+00 : f32
    %347 = vector.broadcast %cst_120 : f32 to vector<2x64xf32>
    %348 = arith.subf %346, %347 : vector<2x64xf32>
    %349 = vector.extract_strided_slice %341 {offsets = [0, 192], sizes = [2, 64], strides = [1, 1]} : vector<2x256xf32> to vector<2x64xf32>
    %350 = arith.mulf %343, %332 : vector<2x64xf32>
    %351 = arith.mulf %342, %348 : vector<2x64xf32>
    %352 = arith.addf %350, %351 : vector<2x64xf32>
    %353 = math.tanh %352 : vector<2x64xf32>
    %354 = arith.mulf %349, %353 : vector<2x64xf32>
    %c0_121 = arith.constant 0 : index
    %c0_122 = arith.constant 0 : index
    %355 = vector.load %arg18[%c0_121, %c0_122] : memref<8x64xf32, #tpu.memory_space<vmem>>, vector<2x64xf32>
    tpu.vector_store %arg18[%c0_121, %c0_122], %354 {strides = array<i32>} : memref<8x64xf32, #tpu.memory_space<vmem>>, vector<2x64xf32>,
    %356 = vector.extract_strided_slice %330 {offsets = [2, 0], sizes = [2, 256], strides = [1, 1]} : vector<8x256xf32> to vector<2x256xf32>
    %357 = arith.truncf %354 : vector<2x64xf32> to vector<2x64xbf16>
    %cst_123 = arith.constant dense<0.000000e+00> : vector<2x256xf32>
    %358 = tpu.matmul %357, %326, %cst_123 {dimension_numbers = #tpu.dot_dimension_numbers<[1], [0], [0], [1], [0, 0, 1, 1], [], []>} : vector<2x64xbf16>, vector<64x256xbf16>, vector<2x256xf32> -> vector<2x256xf32>
    %359 = arith.addf %356, %358 : vector<2x256xf32>
    %360 = arith.negf %359 : vector<2x256xf32>
    %361 = math.exp %360 : vector<2x256xf32>
    %cst_124 = arith.constant 1.000000e+00 : f32
    %362 = vector.broadcast %cst_124 : f32 to vector<2x256xf32>
    %363 = arith.addf %362, %361 : vector<2x256xf32>
    %364 = arith.divf %362, %363 : vector<2x256xf32>
    %365 = vector.extract_strided_slice %364 {offsets = [0, 0], sizes = [2, 64], strides = [1, 1]} : vector<2x256xf32> to vector<2x64xf32>
    %366 = vector.extract_strided_slice %364 {offsets = [0, 64], sizes = [2, 64], strides = [1, 1]} : vector<2x256xf32> to vector<2x64xf32>
    %367 = vector.extract_strided_slice %364 {offsets = [0, 128], sizes = [2, 64], strides = [1, 1]} : vector<2x256xf32> to vector<2x64xf32>
    %cst_125 = arith.constant 2.000000e+00 : f32
    %368 = vector.broadcast %cst_125 : f32 to vector<2x64xf32>
    %369 = arith.mulf %368, %367 : vector<2x64xf32>
    %cst_126 = arith.constant 1.000000e+00 : f32
    %370 = vector.broadcast %cst_126 : f32 to vector<2x64xf32>
    %371 = arith.subf %369, %370 : vector<2x64xf32>
    %372 = vector.extract_strided_slice %364 {offsets = [0, 192], sizes = [2, 64], strides = [1, 1]} : vector<2x256xf32> to vector<2x64xf32>
    %373 = arith.mulf %366, %352 : vector<2x64xf32>
    %374 = arith.mulf %365, %371 : vector<2x64xf32>
    %375 = arith.addf %373, %374 : vector<2x64xf32>
    %376 = math.tanh %375 : vector<2x64xf32>
    %377 = arith.mulf %372, %376 : vector<2x64xf32>
    %c2_127 = arith.constant 2 : index
    %c0_128 = arith.constant 0 : index
    %378 = vector.load %arg18[%c2_127, %c0_128] : memref<8x64xf32, #tpu.memory_space<vmem>>, vector<2x64xf32>
    tpu.vector_store %arg18[%c2_127, %c0_128], %377 {strides = array<i32>} : memref<8x64xf32, #tpu.memory_space<vmem>>, vector<2x64xf32>,
    %379 = vector.extract_strided_slice %330 {offsets = [4, 0], sizes = [2, 256], strides = [1, 1]} : vector<8x256xf32> to vector<2x256xf32>
    %380 = arith.truncf %377 : vector<2x64xf32> to vector<2x64xbf16>
    %cst_129 = arith.constant dense<0.000000e+00> : vector<2x256xf32>
    %381 = tpu.matmul %380, %326, %cst_129 {dimension_numbers = #tpu.dot_dimension_numbers<[1], [0], [0], [1], [0, 0, 1, 1], [], []>} : vector<2x64xbf16>, vector<64x256xbf16>, vector<2x256xf32> -> vector<2x256xf32>
    %382 = arith.addf %379, %381 : vector<2x256xf32>
    %383 = arith.negf %382 : vector<2x256xf32>
    %384 = math.exp %383 : vector<2x256xf32>
    %cst_130 = arith.constant 1.000000e+00 : f32
    %385 = vector.broadcast %cst_130 : f32 to vector<2x256xf32>
    %386 = arith.addf %385, %384 : vector<2x256xf32>
    %387 = arith.divf %385, %386 : vector<2x256xf32>
    %388 = vector.extract_strided_slice %387 {offsets = [0, 0], sizes = [2, 64], strides = [1, 1]} : vector<2x256xf32> to vector<2x64xf32>
    %389 = vector.extract_strided_slice %387 {offsets = [0, 64], sizes = [2, 64], strides = [1, 1]} : vector<2x256xf32> to vector<2x64xf32>
    %390 = vector.extract_strided_slice %387 {offsets = [0, 128], sizes = [2, 64], strides = [1, 1]} : vector<2x256xf32> to vector<2x64xf32>
    %cst_131 = arith.constant 2.000000e+00 : f32
    %391 = vector.broadcast %cst_131 : f32 to vector<2x64xf32>
    %392 = arith.mulf %391, %390 : vector<2x64xf32>
    %cst_132 = arith.constant 1.000000e+00 : f32
    %393 = vector.broadcast %cst_132 : f32 to vector<2x64xf32>
    %394 = arith.subf %392, %393 : vector<2x64xf32>
    %395 = vector.extract_strided_slice %387 {offsets = [0, 192], sizes = [2, 64], strides = [1, 1]} : vector<2x256xf32> to vector<2x64xf32>
    %396 = arith.mulf %389, %375 : vector<2x64xf32>
    %397 = arith.mulf %388, %394 : vector<2x64xf32>
    %398 = arith.addf %396, %397 : vector<2x64xf32>
    %399 = math.tanh %398 : vector<2x64xf32>
    %400 = arith.mulf %395, %399 : vector<2x64xf32>
    %c4_133 = arith.constant 4 : index
    %c0_134 = arith.constant 0 : index
    %401 = vector.load %arg18[%c4_133, %c0_134] : memref<8x64xf32, #tpu.memory_space<vmem>>, vector<2x64xf32>
    tpu.vector_store %arg18[%c4_133, %c0_134], %400 {strides = array<i32>} : memref<8x64xf32, #tpu.memory_space<vmem>>, vector<2x64xf32>,
    %402 = vector.extract_strided_slice %330 {offsets = [6, 0], sizes = [2, 256], strides = [1, 1]} : vector<8x256xf32> to vector<2x256xf32>
    %403 = arith.truncf %400 : vector<2x64xf32> to vector<2x64xbf16>
    %cst_135 = arith.constant dense<0.000000e+00> : vector<2x256xf32>
    %404 = tpu.matmul %403, %326, %cst_135 {dimension_numbers = #tpu.dot_dimension_numbers<[1], [0], [0], [1], [0, 0, 1, 1], [], []>} : vector<2x64xbf16>, vector<64x256xbf16>, vector<2x256xf32> -> vector<2x256xf32>
    %405 = arith.addf %402, %404 : vector<2x256xf32>
    %406 = arith.negf %405 : vector<2x256xf32>
    %407 = math.exp %406 : vector<2x256xf32>
    %cst_136 = arith.constant 1.000000e+00 : f32
    %408 = vector.broadcast %cst_136 : f32 to vector<2x256xf32>
    %409 = arith.addf %408, %407 : vector<2x256xf32>
    %410 = arith.divf %408, %409 : vector<2x256xf32>
    %411 = vector.extract_strided_slice %410 {offsets = [0, 0], sizes = [2, 64], strides = [1, 1]} : vector<2x256xf32> to vector<2x64xf32>
    %412 = vector.extract_strided_slice %410 {offsets = [0, 64], sizes = [2, 64], strides = [1, 1]} : vector<2x256xf32> to vector<2x64xf32>
    %413 = vector.extract_strided_slice %410 {offsets = [0, 128], sizes = [2, 64], strides = [1, 1]} : vector<2x256xf32> to vector<2x64xf32>
    %cst_137 = arith.constant 2.000000e+00 : f32
    %414 = vector.broadcast %cst_137 : f32 to vector<2x64xf32>
    %415 = arith.mulf %414, %413 : vector<2x64xf32>
    %cst_138 = arith.constant 1.000000e+00 : f32
    %416 = vector.broadcast %cst_138 : f32 to vector<2x64xf32>
    %417 = arith.subf %415, %416 : vector<2x64xf32>
    %418 = vector.extract_strided_slice %410 {offsets = [0, 192], sizes = [2, 64], strides = [1, 1]} : vector<2x256xf32> to vector<2x64xf32>
    %419 = arith.mulf %412, %398 : vector<2x64xf32>
    %420 = arith.mulf %411, %417 : vector<2x64xf32>
    %421 = arith.addf %419, %420 : vector<2x64xf32>
    %422 = math.tanh %421 : vector<2x64xf32>
    %423 = arith.mulf %418, %422 : vector<2x64xf32>
    %c6_139 = arith.constant 6 : index
    %c0_140 = arith.constant 0 : index
    %424 = vector.load %arg18[%c6_139, %c0_140] : memref<8x64xf32, #tpu.memory_space<vmem>>, vector<2x64xf32>
    tpu.vector_store %arg18[%c6_139, %c0_140], %423 {strides = array<i32>} : memref<8x64xf32, #tpu.memory_space<vmem>>, vector<2x64xf32>,
    %cst_141 = arith.constant 0.000000e+00 : f32
    %425 = vector.broadcast %cst_141 : f32 to vector<2x2xf32>
    %c0_142 = arith.constant 0 : index
    %c0_143 = arith.constant 0 : index
    %426 = vector.load %arg18[%c0_142, %c0_143] : memref<8x64xf32, #tpu.memory_space<vmem>>, vector<2x64xf32>
    %427 = arith.truncf %426 : vector<2x64xf32> to vector<2x64xbf16>
    %c0_144 = arith.constant 0 : index
    %c0_145 = arith.constant 0 : index
    %428 = vector.load %arg15[%c0_144, %c0_145] : memref<256x2xbf16, #tpu.memory_space<vmem>>, vector<64x2xbf16>
    %cst_146 = arith.constant dense<0.000000e+00> : vector<2x2xf32>
    %429 = tpu.matmul %427, %428, %cst_146 {dimension_numbers = #tpu.dot_dimension_numbers<[1], [0], [0], [1], [0, 0, 1, 1], [], []>} : vector<2x64xbf16>, vector<64x2xbf16>, vector<2x2xf32> -> vector<2x2xf32>
    %430 = arith.addf %425, %429 : vector<2x2xf32>
    %c2_147 = arith.constant 2 : index
    %c0_148 = arith.constant 0 : index
    %431 = vector.load %arg18[%c2_147, %c0_148] : memref<8x64xf32, #tpu.memory_space<vmem>>, vector<2x64xf32>
    %432 = arith.truncf %431 : vector<2x64xf32> to vector<2x64xbf16>
    %c64 = arith.constant 64 : index
    %c0_149 = arith.constant 0 : index
    %433 = vector.load %arg15[%c64, %c0_149] : memref<256x2xbf16, #tpu.memory_space<vmem>>, vector<64x2xbf16>
    %cst_150 = arith.constant dense<0.000000e+00> : vector<2x2xf32>
    %434 = tpu.matmul %432, %433, %cst_150 {dimension_numbers = #tpu.dot_dimension_numbers<[1], [0], [0], [1], [0, 0, 1, 1], [], []>} : vector<2x64xbf16>, vector<64x2xbf16>, vector<2x2xf32> -> vector<2x2xf32>
    %435 = arith.addf %430, %434 : vector<2x2xf32>
    %c4_151 = arith.constant 4 : index
    %c0_152 = arith.constant 0 : index
    %436 = vector.load %arg18[%c4_151, %c0_152] : memref<8x64xf32, #tpu.memory_space<vmem>>, vector<2x64xf32>
    %437 = arith.truncf %436 : vector<2x64xf32> to vector<2x64xbf16>
    %c128 = arith.constant 128 : index
    %c0_153 = arith.constant 0 : index
    %438 = vector.load %arg15[%c128, %c0_153] : memref<256x2xbf16, #tpu.memory_space<vmem>>, vector<64x2xbf16>
    %cst_154 = arith.constant dense<0.000000e+00> : vector<2x2xf32>
    %439 = tpu.matmul %437, %438, %cst_154 {dimension_numbers = #tpu.dot_dimension_numbers<[1], [0], [0], [1], [0, 0, 1, 1], [], []>} : vector<2x64xbf16>, vector<64x2xbf16>, vector<2x2xf32> -> vector<2x2xf32>
    %440 = arith.addf %435, %439 : vector<2x2xf32>
    %c6_155 = arith.constant 6 : index
    %c0_156 = arith.constant 0 : index
    %441 = vector.load %arg18[%c6_155, %c0_156] : memref<8x64xf32, #tpu.memory_space<vmem>>, vector<2x64xf32>
    %442 = arith.truncf %441 : vector<2x64xf32> to vector<2x64xbf16>
    %c192 = arith.constant 192 : index
    %c0_157 = arith.constant 0 : index
    %443 = vector.load %arg15[%c192, %c0_157] : memref<256x2xbf16, #tpu.memory_space<vmem>>, vector<64x2xbf16>
    %cst_158 = arith.constant dense<0.000000e+00> : vector<2x2xf32>
    %444 = tpu.matmul %442, %443, %cst_158 {dimension_numbers = #tpu.dot_dimension_numbers<[1], [0], [0], [1], [0, 0, 1, 1], [], []>} : vector<2x64xbf16>, vector<64x2xbf16>, vector<2x2xf32> -> vector<2x2xf32>
    %445 = arith.addf %440, %444 : vector<2x2xf32>
    %c0_159 = arith.constant 0 : index
    %c0_160 = arith.constant 0 : index
    %446 = vector.load %arg16[%c0_159, %c0_160] : memref<1x2xf32, #tpu.memory_space<vmem>>, vector<1x2xf32>
    %447 = vector.broadcast %446 : vector<1x2xf32> to vector<2x2xf32>
    %448 = arith.addf %445, %447 : vector<2x2xf32>
    %449 = arith.negf %448 : vector<2x2xf32>
    %450 = math.exp %449 : vector<2x2xf32>
    %cst_161 = arith.constant 1.000000e+00 : f32
    %451 = vector.broadcast %cst_161 : f32 to vector<2x2xf32>
    %452 = arith.addf %451, %450 : vector<2x2xf32>
    %453 = arith.divf %451, %452 : vector<2x2xf32>
    %c0_162 = arith.constant 0 : index
    %c0_163 = arith.constant 0 : index
    %454 = vector.load %arg17[%c0_162, %c0_163] : memref<2x2xf32, #tpu.memory_space<vmem>>, vector<2x2xf32>
    tpu.vector_store %arg17[%c0_162, %c0_163], %453 {strides = array<i32>} : memref<2x2xf32, #tpu.memory_space<vmem>>, vector<2x2xf32>,
    return
  }
}

</mosaic_0001>

<bundles_post_ra>
// kernel: lstm_forward.1
= control target key start
LH: loop header
LB: loop body
LE: loop exit
PB: predicated region body
PF: predicated region fallthrough
CT: control target
= control target key end

     0   :  { %s4160_s0 = inlined_call_operand.vmem [shape: s32[8,1], index: 0, kind: input, shape index: {}]   ;;  %s4161_s1 = inlined_call_operand.vmem [shape: s32[8,1], index: 1, kind: input, shape index: {}]   ;;  %s4162_s2 = inlined_call_operand.vmem [shape: bf16[50,16], index: 2, kind: input, shape index: {}]   ;;  %s4163_s3 = inlined_call_operand.hbm [shape: bf16[32,256], index: 3, kind: input, shape index: {}]   ;;  %s4164_s4 = inlined_call_operand.vmem [shape: bf16[64,256], index: 4, kind: input, shape index: {}]   ;;  %s4165_s5 = inlined_call_operand.hbm [shape: f32[1,256], index: 5, kind: input, shape index: {}]   ;;  %s4166_s6 = inlined_call_operand.vmem [shape: bf16[64,256], index: 6, kind: input, shape index: {}]   ;;  %s4167_s7 = inlined_call_operand.vmem [shape: bf16[64,256], index: 7, kind: input, shape index: {}]   ;;  %s4168_s8 = inlined_call_operand.hbm [shape: f32[1,256], index: 8, kind: input, shape index: {}]   ;;  %s4169_s9 = inlined_call_operand.hbm [shape: bf16[64,256], index: 9, kind: input, shape index: {}]   ;;  %s4170_s10 = inlined_call_operand.hbm [shape: bf16[64,256], index: 10, kind: input, shape index: {}]   ;;  %s4171_s11 = inlined_call_operand.hbm [shape: f32[1,256], index: 11, kind: input, shape index: {}]   ;;  %s4172_s12 = inlined_call_operand.vmem [shape: bf16[64,256], index: 12, kind: input, shape index: {}]   ;;  %s4173_s13 = inlined_call_operand.hbm [shape: bf16[64,256], index: 13, kind: input, shape index: {}]   ;;  %s4174_s14 = inlined_call_operand.vmem [shape: f32[1,256], index: 14, kind: input, shape index: {}]   ;;  %s4175_s15 = inlined_call_operand.vmem [shape: bf16[256,2], index: 15, kind: input, shape index: {}]   ;;  %s4176_s16 = inlined_call_operand.hbm [shape: f32[1,2], index: 16, kind: input, shape index: {}]   ;;  %s4177_s17 = inlined_call_operand.hbm [shape: f32[2,2], index: 17, kind: output, shape index: {}]  }
   0x1   :  { %4178 = sst [smem:[#allocation24_spill]] %s4160_s0 }
   0x2   :  { %4179 = sst [smem:[#allocation25_spill]] %s4161_s1 }
   0x3   :  { %22 = vsyncpa [#allocation4], 0 }
   0x4   :  { %23 = vsyncpa [#allocation7], 0 }
   0x5   :  { %24 = vsyncpa [#allocation10], 0 }
   0x6   :  { %25 = vsyncpa [#allocation13], 0 }
   0x7   :  { %26 = vsyncpa [#allocation16], 0 }
   0x8   :  { %27 = vsyncpa [#allocation5], 0  ;;  %s3340_s24 = smov [#allocation6]   ;;  %s3130_s28 = scalar_lea.hbm %s4165_s5, 32 }
   0x9   :  { %s54_s25 = sshll.u32 %s3340_s24, 4  ;;  %p3131_p0 = scmp.ne.s32.totalorder %s4165_s5, %s3130_s28  ;;  %s55_s25 = int_to_ptr.vmem [resolvable:$true] %s54_s25 }
   0xa   :  { %p3134_p1 = scmp.lt.u32.totalorder %s3130_s28, %s4165_s5 }
   0xc   :  { %p3136_p2 = pnand %p3134_p1, %p3131_p0 }
   0xe   :  { %3139 = shalt.err (!%p3136_p2)
}
   0xf   :  { %s3140_s19 = scalar_lea.vmem %s55_s25, 32  ;;  %p3145_p4 = scmp.lt.s32.totalorder %s55_s25, %s55_s25 }
  0x10   :  { %p3141_p3 = scmp.ne.s32.totalorder %s55_s25, %s3140_s19  ;;  %p3146_p5 = scmp.lt.s32.totalorder %s3140_s19, %s3140_s19 }
  0x12   :  { %p3147_p6 = por %p3146_p5, %p3145_p4 }
  0x14   :  { %p3148_p7 = pnand %p3147_p6, %p3141_p3 }
  0x16   :  { %3151 = shalt.err (!%p3148_p7)
}
  0x17   :  { %57 = dma.hbm_to_vmem [thread:$0]  %s4165_s5, 32, %s55_s25, [#allocation7]  }
  0x18   :  { %s3341_s21 = smov [#allocation9]   ;;  %s3342_s23 = smov [#allocation12]  }
  0x19   :  { %s77_s22 = sshll.u32 %s3341_s21, 4  ;;  %s102_s24 = sshll.u32 %s3342_s23, 4  ;;  %s78_s22 = int_to_ptr.vmem [resolvable:$true] %s77_s22  ;;  %s103_s24 = int_to_ptr.vmem [resolvable:$true] %s102_s24 }
  0x1a   :  { %s3152_s28 = scalar_lea.hbm %s4169_s9, 1024 }
  0x1b   :  { %p3153_p8 = scmp.ne.s32.totalorder %s4169_s9, %s3152_s28  ;;  %p3156_p9 = scmp.lt.u32.totalorder %s3152_s28, %s4169_s9 }
  0x1d   :  { %p3158_p10 = pnand %p3156_p9, %p3153_p8 }
  0x1f   :  { %3161 = shalt.err (!%p3158_p10)
}
  0x20   :  { %s3162_s5 = scalar_lea.vmem %s78_s22, 1024  ;;  %p3167_p12 = scmp.lt.s32.totalorder %s78_s22, %s78_s22 }
  0x21   :  { %p3163_p11 = scmp.ne.s32.totalorder %s78_s22, %s3162_s5  ;;  %p3168_p13 = scmp.lt.s32.totalorder %s3162_s5, %s3162_s5 }
  0x23   :  { %p3169_p0 = por %p3168_p13, %p3167_p12 }
  0x25   :  { %p3170_p1 = pnand %p3169_p0, %p3163_p11 }
  0x27   :  { %3173 = shalt.err (!%p3170_p1)
}
  0x28   :  { %s3343_s25 = smov 128   ;;  %s3344_s19 = smov 8  }
  0x29   :  { %83 = dma.hbm_to_vmem [thread:$0]  %s4169_s9, 1024, %s78_s22, [#allocation10], %s3343_s25, %s3343_s25, %s3344_s19  }
  0x2a   :  { %s3174_s26 = scalar_lea.hbm %s4171_s11, 32 }
  0x2b   :  { %p3175_p2 = scmp.ne.s32.totalorder %s4171_s11, %s3174_s26  ;;  %p3178_p3 = scmp.lt.u32.totalorder %s3174_s26, %s4171_s11 }
  0x2d   :  { %p3180_p4 = pnand %p3178_p3, %p3175_p2 }
  0x2f   :  { %3183 = shalt.err (!%p3180_p4)
}
  0x30   :  { %s3184_s30 = scalar_lea.vmem %s103_s24, 32  ;;  %p3189_p6 = scmp.lt.s32.totalorder %s103_s24, %s103_s24 }
  0x31   :  { %p3185_p5 = scmp.ne.s32.totalorder %s103_s24, %s3184_s30  ;;  %p3190_p7 = scmp.lt.s32.totalorder %s3184_s30, %s3184_s30 }
  0x33   :  { %p3191_p8 = por %p3190_p7, %p3189_p6 }
  0x35   :  { %p3192_p9 = pnand %p3191_p8, %p3185_p5 }
  0x37   :  { %3195 = shalt.err (!%p3192_p9)
}
  0x38   :  { %105 = dma.hbm_to_vmem [thread:$0]  %s4171_s11, 32, %s103_s24, [#allocation13]  }
  0x39   :  { %s3345_s18 = smov [#allocation3]   ;;  %s3346_s1 = smov [#allocation8]  }
  0x3a   :  { %s39_s5 = sshll.u32 %s3345_s18, 4  ;;  %s68_s20 = sshll.u32 %s3346_s1, 4  ;;  %s40_s5 = int_to_ptr.vmem [resolvable:$true] %s39_s5  ;;  %s69_s20 = int_to_ptr.vmem [resolvable:$true] %s68_s20 }
  0x3b   :  { %s3196_s26 = scalar_lea.hbm %s4163_s3, 512 }
  0x3c   :  { %p3197_p10 = scmp.ne.s32.totalorder %s4163_s3, %s3196_s26  ;;  %p3200_p11 = scmp.lt.u32.totalorder %s3196_s26, %s4163_s3 }
  0x3e   :  { %p3202_p12 = pnand %p3200_p11, %p3197_p10 }
  0x40   :  { %3205 = shalt.err (!%p3202_p12)
}
  0x41   :  { %s3206_s11 = scalar_lea.vmem %s40_s5, 512  ;;  %p3211_p0 = scmp.lt.s32.totalorder %s40_s5, %s40_s5 }
  0x42   :  { %p3207_p13 = scmp.ne.s32.totalorder %s40_s5, %s3206_s11  ;;  %p3212_p1 = scmp.lt.s32.totalorder %s3206_s11, %s3206_s11 }
  0x44   :  { %p3213_p2 = por %p3212_p1, %p3211_p0 }
  0x46   :  { %p3214_p3 = pnand %p3213_p2, %p3207_p13 }
  0x48   :  { %3217 = shalt.err (!%p3214_p3)
}
  0x49   :  { %45 = dma.hbm_to_vmem [thread:$0]  %s4163_s3, 512, %s40_s5, [#allocation4], %s3343_s25, %s3343_s25, %s3344_s19  }
  0x4a   :  { %s3218_s18 = scalar_lea.hbm %s4168_s8, 32 }
  0x4b   :  { %p3219_p4 = scmp.ne.s32.totalorder %s4168_s8, %s3218_s18  ;;  %p3222_p5 = scmp.lt.u32.totalorder %s3218_s18, %s4168_s8 }
  0x4d   :  { %p3224_p6 = pnand %p3222_p5, %p3219_p4 }
  0x4f   :  { %3227 = shalt.err (!%p3224_p6)
}
  0x50   :  { %s3228_s27 = scalar_lea.vmem %s69_s20, 32  ;;  %p3233_p8 = scmp.lt.s32.totalorder %s69_s20, %s69_s20 }
  0x51   :  { %p3229_p7 = scmp.ne.s32.totalorder %s69_s20, %s3228_s27  ;;  %p3234_p9 = scmp.lt.s32.totalorder %s3228_s27, %s3228_s27 }
  0x53   :  { %p3235_p10 = por %p3234_p9, %p3233_p8 }
  0x55   :  { %p3236_p11 = pnand %p3235_p10, %p3229_p7 }
  0x57   :  { %3239 = shalt.err (!%p3236_p11)
}
  0x58   :  { %71 = dma.hbm_to_vmem [thread:$0]  %s4168_s8, 32, %s69_s20, [#allocation7]  }
  0x59   :  { %s3347_s28 = smov [#allocation11]   ;;  %s3348_s0 = smov [#allocation14]  }
  0x5a   :  { %s89_s29 = sshll.u32 %s3347_s28, 4  ;;  %s113_s11 = sshll.u32 %s3348_s0, 4  ;;  %s90_s29 = int_to_ptr.vmem [resolvable:$true] %s89_s29  ;;  %s114_s11 = int_to_ptr.vmem [resolvable:$true] %s113_s11 }
  0x5b   :  { %s3240_s9 = scalar_lea.hbm %s4170_s10, 1024 }
  0x5c   :  { %p3241_p12 = scmp.ne.s32.totalorder %s4170_s10, %s3240_s9  ;;  %p3244_p13 = scmp.lt.u32.totalorder %s3240_s9, %s4170_s10 }
  0x5e   :  { %p3246_p0 = pnand %p3244_p13, %p3241_p12 }
  0x60   :  { %3249 = shalt.err (!%p3246_p0)
}
  0x61   :  { %s3250_s8 = scalar_lea.vmem %s90_s29, 1024  ;;  %p3255_p2 = scmp.lt.s32.totalorder %s90_s29, %s90_s29 }
  0x62   :  { %p3251_p1 = scmp.ne.s32.totalorder %s90_s29, %s3250_s8  ;;  %p3256_p3 = scmp.lt.s32.totalorder %s3250_s8, %s3250_s8 }
  0x64   :  { %p3257_p4 = por %p3256_p3, %p3255_p2 }
  0x66   :  { %p3258_p5 = pnand %p3257_p4, %p3251_p1 }
  0x68   :  { %3261 = shalt.err (!%p3258_p5)
}
  0x69   :  { %95 = dma.hbm_to_vmem [thread:$0]  %s4170_s10, 1024, %s90_s29, [#allocation10], %s3343_s25, %s3343_s25, %s3344_s19  }
  0x6a   :  { %s3262_s3 = scalar_lea.hbm %s4173_s13, 1024 }
  0x6b   :  { %p3263_p6 = scmp.ne.s32.totalorder %s4173_s13, %s3262_s3  ;;  %p3266_p7 = scmp.lt.u32.totalorder %s3262_s3, %s4173_s13 }
  0x6d   :  { %p3268_p8 = pnand %p3266_p7, %p3263_p6 }
  0x6f   :  { %3271 = shalt.err (!%p3268_p8)
}
  0x70   :  { %s3272_s30 = scalar_lea.vmem %s114_s11, 1024  ;;  %p3277_p10 = scmp.lt.s32.totalorder %s114_s11, %s114_s11 }
  0x71   :  { %p3273_p9 = scmp.ne.s32.totalorder %s114_s11, %s3272_s30  ;;  %p3278_p11 = scmp.lt.s32.totalorder %s3272_s30, %s3272_s30 }
  0x73   :  { %p3279_p12 = por %p3278_p11, %p3277_p10 }
  0x75   :  { %p3280_p13 = pnand %p3279_p12, %p3273_p9 }
  0x77   :  { %3283 = shalt.err (!%p3280_p13)
}
  0x78   :  { %119 = dma.hbm_to_vmem [thread:$0]  %s4173_s13, 1024, %s114_s11, [#allocation13], %s3343_s25, %s3343_s25, %s3344_s19  }
  0x79   :  { %s3349_s9 = smov [#allocation15]   ;;  %s3284_s21 = scalar_lea.hbm %s4176_s16, 16 }
  0x7a   :  { %s130_s22 = sshll.u32 %s3349_s9, 4  ;;  %p3285_p0 = scmp.ne.s32.totalorder %s4176_s16, %s3284_s21  ;;  %s131_s22 = int_to_ptr.vmem [resolvable:$true] %s130_s22 }
  0x7b   :  { %p3288_p1 = scmp.lt.u32.totalorder %s3284_s21, %s4176_s16 }
  0x7d   :  { %p3290_p2 = pnand %p3288_p1, %p3285_p0 }
  0x7f   :  { %3293 = shalt.err (!%p3290_p2)
}
  0x80   :  { %s3294_s27 = scalar_lea.vmem %s131_s22, 16  ;;  %s3298_s13 = scalar_lea.vmem %s131_s22, 32 }
  0x81   :  { %p3295_p3 = scmp.ne.s32.totalorder %s131_s22, %s3294_s27  ;;  %p3299_p4 = scmp.lt.s32.totalorder %s131_s22, %s131_s22 }
  0x82   :  { %p3300_p5 = scmp.lt.s32.totalorder %s3298_s13, %s3294_s27 }
  0x84   :  { %p3301_p6 = por %p3300_p5, %p3299_p4 }
  0x86   :  { %p3302_p7 = pnand %p3301_p6, %p3295_p3 }
  0x88   :  { %3305 = shalt.err (!%p3302_p7)
}
  0x89   :  { %133 = dma.hbm_to_vmem [thread:$0]  %s4176_s16, 16, %s131_s22, [#allocation16]  }
  0x8a   :  { %3328 = dma.done.wait [#allocation4], 512  }
  0x8b   :  { %3329 = vsyncadd [#allocation4], 4294966784 }
  0x8c   :  { %3330 = dma.done.wait [#allocation7], 64  }
  0x8d   :  { %3331 = vsyncadd [#allocation7], 4294967232 }
  0x8e   :  { %3332 = dma.done.wait [#allocation10], 2048  }
  0x8f   :  { %3333 = vsyncadd [#allocation10], 4294965248 }
  0x90   :  { %3334 = dma.done.wait [#allocation13], 1056  }
  0x91   :  { %3335 = vsyncadd [#allocation13], 4294966240 }
  0x92   :  { %3336 = dma.done.wait [#allocation16], 16  }
  0x93   :  { %3337 = vsyncadd [#allocation16], 4294967280  ;;  %v3350_v0 = vmov 0   ;;  %v3351_v1 = vmov 0.0   ;;  %s4180_s3 = sld [smem:[#allocation25_spill]]  ;;  %v2856_v3 = vld [vmem:[%s4162_s2] sm:$0xff]   ;;  %v167_v9 = vlaneseq }
  0x94   :  { %2855 = vset.pattern.permute.xlu0 %v3350_v0  ;;  %2779 = vmatprep.subr.bf16.mxu1 %v3351_v1  ;;  %s4181_s30 = sld [smem:[#allocation24_spill]]  ;;  %v2857_v5 = vld [vmem:[%s4162_s2 + $0x8] sm:$0xff]   ;;  %v2858_v6 = vld [vmem:[%s4162_s2 + $0x10] sm:$0xff]   ;;  %vm3352_vm0 = vmmov 0   ;;  %vm201_vm1 = vcmask 1040384   ;;  %vm197_vm3 = vcmask 408576  }
  0x95   :  { %2767 = vmatprep.subr.bf16.mxu0 %v3351_v1  ;;  %2780 = vmatpush3.bf16.msra.mxu1 %v2856_v3  ;;  %v2859_v7 = vld [vmem:[%s4162_s2 + $0x18] ss:$0 sps:$4 sm:$0x11]   ;;  %v168_v10 = vand.u32 127, %v167_v9  ;;  %v2860_v17 = vld [vmem:[%s4164_s4 + $0x4] ss:$8 sps:$4 sm:$0xff]  }
  0x96   :  { %2768 = vmatpush3.bf16.msra.mxu0 %v2856_v3  ;;  %2781 = vmatprep.subr.bf16.mxu1 %v3351_v1  ;;  %v203_v8 = vsel %vm201_vm1, %v2859_v7, 0  ;;  %v3596_v18 = vld [vmem:[%s4164_s4] ss:$8 sps:$4 sm:$0xff]   ;;  %v3601_v19 = vld [vmem:[%s4164_s4 + $0x14] ss:$8 sps:$4 sm:$0xff]   ;;  %vm300_vm5 = vcmask 130048  }
  0x97   :  { %2769 = vmatprep.subr.bf16.mxu0 %v3351_v1  ;;  %2787 = vmatprep.mubr.msk.bf16.mxu1 %vm3352_vm0, %v3351_v1  ;;  %v2866_v20 = vld [vmem:[#allocation3] ss:$8 sps:$4 sm:$0xff]   ;;  %v2868_v21 = vld [vmem:[#allocation3 + $0x4] ss:$8 sps:$4 sm:$0xff]   ;;  %v2874_v23 = vld [vmem:[#allocation3 + $0x14] ss:$8 sps:$4 sm:$0xff]  }
  0x98   :  { %2775 = vmatprep.mubr.msk.bf16.mxu0 %vm3352_vm0, %v3351_v1  ;;  %v3607_v22 = vld [vmem:[%s4164_s4 + $0x10] ss:$8 sps:$4 sm:$0xff]   ;;  %v3613_v24 = vld [vmem:[%s4164_s4 + $0x24] ss:$8 sps:$4 sm:$0xff]   ;;  %v3619_v26 = vld [vmem:[%s4164_s4 + $0x20] ss:$8 sps:$4 sm:$0xff]  }
  0x99   :  { %v245_v2 = vld [vmem:[%s4180_s3] sm:$0xff]  ;;  %2782 = vmatpush3.bf16.msra.mxu1 %v2857_v5  ;;  %v3625_v27 = vld [vmem:[%s4164_s4 + $0x34] ss:$8 sps:$4 sm:$0xff]   ;;  %v3631_v28 = vld [vmem:[%s4164_s4 + $0x30] ss:$8 sps:$4 sm:$0xff]   ;;  %s3353_s4 = smov 16  }
  0x9a   :  { %247 = vperm.xlu0 %2855, %v245_v2   ;;  %v166_v4 = vld [vmem:[%s4181_s30] sm:$0xff]  ;;  %2770 = vmatpush3.bf16.msra.mxu0 %v2857_v5  ;;  %vm347_vm6 = vcmask 261120   ;;  %v318_v44 = vshrl.u32 %v167_v9, 7  ;;  %v315_v47 = vld [vmem:[#allocation6] sm:$0x3]  ;;  %s3354_s24 = smov 64  }
  0x9b   :  { %2783 = vmatprep.subr.bf16.mxu1 %v3351_v1  ;;  %2771 = vmatprep.subr.bf16.mxu0 %v3351_v1  ;;  %v2872_v25 = vld [vmem:[#allocation3 + $0x10] ss:$8 sps:$4 sm:$0xff]   ;;  %vm432_vm7 = vcmask 523264   ;;  %vm506_vm8 = vcmask 517120   ;;  %vm683_vm9 = vcmask 521220   ;;  %vm594_vm10 = vcmask 519170  }
  0x9c   :  { %v3653_v45 = vsub.s32 0, %v318_v44  ;;  %v3655_v46 = vsub.s32 1, %v318_v44  ;;  %vm772_vm11 = vcmask 523270   ;;  %vm2562_vm12 = vcmask 9216  }
  0x9d   :  { %2784 = vmatpush3.bf16.msra.mxu1 %v2858_v6 }
  0x9e   :  { %170 = vperm.xlu0 %2855, %v166_v4   ;;  %2772 = vmatpush3.bf16.msra.mxu0 %v2858_v6  ;;  %v320_v48 = vrot.slane %v315_v47, %v3653_v45  ;;  %v324_v49 = vrot.slane %v315_v47, %v3655_v46 }
  0x9f   :  { %2785 = vmatprep.subr.bf16.mxu1 %v3351_v1  ;;  %2773 = vmatprep.subr.bf16.mxu0 %v3351_v1 }
  0xa1   :  { %2786 = vmatpush3.bf16.msra.mxu1 %v203_v8 }
  0xa2   :  { %2774 = vmatpush3.bf16.msra.mxu0 %v203_v8  ;;  %436 = vmatprep.subr.bf16.mxu1 %v2860_v17 }
  0xa3   :  { %351 = vmatprep.subr.bf16.mxu0 %v2868_v21 }
 0x119   :  { %v248_v11 = vpop.permute.xlu0 %247 }
 0x11a   :  { %vm249_vm2 = vcmp.eq.s32.totalorder %v168_v10, %v248_v11 }
 0x11b   :  { %v2589_v12 = vsel %vm249_vm2, 1.0, %v3351_v1 }
 0x11c   :  { %v252_v13 = vpack.c.bf16 %v2589_v12, %v2589_v12 }
 0x11d   :  { %v171_v14 = vpop.permute.xlu0 %170 }
 0x11e   :  { %vm172_vm4 = vcmp.eq.s32.totalorder %v168_v10, %v171_v14  ;;  %2788 = vmatmul.mubr.msk.bf16.vlgmr.msra.gmra.mrb[0].mxu1 %vm197_vm3, %v252_v13 }
 0x11f   :  { %v2583_v15 = vsel %vm172_vm4, 1.0, %v3351_v1  ;;  %468 = vmatprep.mubr.bf16.mxu1 %v3350_v0  ;;  %437 = vmatpush1.bf16.msra.mxu1 %v3596_v18 }
 0x120   :  { %v175_v16 = vpack.c.bf16 %v2583_v15, %v2583_v15  ;;  %438 = vmatprep.subr.bf16.mxu1 %v3601_v19 }
 0x122   :  { %2776 = vmatmul.mubr.msk.bf16.vlgmr.msra.gmra.mrb[0].mxu0 %vm197_vm3, %v175_v16 }
 0x123   :  { %383 = vmatprep.mubr.bf16.mxu0 %v3350_v0  ;;  %352 = vmatpush1.bf16.msra.mxu0 %v2866_v20 }
 0x124   :  { %353 = vmatprep.subr.bf16.mxu0 %v2874_v23  ;;  %439 = vmatpush1.bf16.msra.mxu1 %v3607_v22 }
 0x125   :  { %440 = vmatprep.subr.bf16.mxu1 %v3613_v24 }
 0x127   :  { %354 = vmatpush1.bf16.msra.mxu0 %v2872_v25 }
 0x128   :  { %515 = vmatprep.subr.bf16.mxu0 %v2860_v17  ;;  %441 = vmatpush1.bf16.msra.mxu1 %v3619_v26 }
 0x129   :  { %442 = vmatprep.subr.bf16.mxu1 %v3625_v27 }
 0x12c   :  { %443 = vmatpush1.bf16.msra.mxu1 %v3631_v28 }
 0x12d   :  { %604 = vmatprep.subr.bf16.mxu1 %v2860_v17 }
 0x12f   :  { %469 = vmatmul.mubr.bf16.vlgmr.msra.gmra.mrb[4].mxu1 %v3350_v0 }
 0x130   :  { %605 = vmatpush1.bf16.msra.mxu1 %v3596_v18  ;;  %636 = vmatprep.mubr.bf16.mxu1 %v3350_v0 }
 0x131   :  { %606 = vmatprep.subr.bf16.mxu1 %v3601_v19 }
 0x134   :  { %607 = vmatpush1.bf16.msra.mxu1 %v3607_v22 }
 0x135   :  { %608 = vmatprep.subr.bf16.mxu1 %v3613_v24 }
 0x138   :  { %609 = vmatpush1.bf16.msra.mxu1 %v3619_v26 }
 0x139   :  { %610 = vmatprep.subr.bf16.mxu1 %v3625_v27 }
 0x13c   :  { %611 = vmatpush1.bf16.msra.mxu1 %v3631_v28 }
 0x1f1   :  { %v290_v29 = vpop.f32.mrb[0].mxu1 }
 0x1f2   :  { %297 = vrot.lane.b32.xlu1 %v290_v29, %s3353_s4  ;;  %v2789_v30 = vpop.f32.mrb[1].mxu1 }
 0x1f3   :  { %v293_v31 = vpop.f32.mrb[2].mxu1 }
 0x1f4   :  { %v2790_v32 = vpop.f32.mrb[3].mxu1 }
 0x1f5   :  { %v239_v33 = vpop.f32.mrb[0].mxu0 }
 0x1f6   :  { %v2777_v34 = vpop.f32.mrb[1].mxu0 }
 0x1f7   :  { %v242_v35 = vpop.f32.mrb[2].mxu0 }
 0x1f8   :  { %v2778_v36 = vpop.f32.mrb[3].mxu0 }
 0x202   :  { %v470_v37 = vpop.f32.mrb[4].mxu1 }
 0x203   :  { %v472_v41 = vpop.f32.mrb[5].mxu1 }
 0x204   :  { %v474_v42 = vpop.f32.mrb[6].mxu1 }
 0x205   :  { %v475_v43 = vpop.f32.mrb[7].mxu1 }
 0x264   :  { %v298_v38 = vpop.permute.xlu1 %297 }
 0x265   :  { %v301_v39 = vsel %vm300_vm5, %v239_v33, %v298_v38 }
 0x266   :  { %v302_v40 = vpack.c.bf16 %v301_v39, %v301_v39 }
 0x268   :  { %2595 = vmatmul.mubr.msk.bf16.vlgmr.msra.gmra.mrb[4].mxu0 %vm347_vm6, %v302_v40 }
 0x269   :  { %516 = vmatpush1.bf16.msra.mxu0 %v3596_v18  ;;  %547 = vmatprep.mubr.bf16.mxu0 %v3350_v0 }
 0x26a   :  { %517 = vmatprep.subr.bf16.mxu0 %v3601_v19 }
 0x26d   :  { %518 = vmatpush1.bf16.msra.mxu0 %v3607_v22 }
 0x26e   :  { %519 = vmatprep.subr.bf16.mxu0 %v3613_v24 }
 0x271   :  { %520 = vmatpush1.bf16.msra.mxu0 %v3619_v26 }
 0x272   :  { %521 = vmatprep.subr.bf16.mxu0 %v3625_v27 }
 0x275   :  { %522 = vmatpush1.bf16.msra.mxu0 %v3631_v28 }
 0x276   :  { %693 = vmatprep.subr.bf16.mxu0 %v2860_v17 }
 0x33b   :  { %v385_v50 = vpop.f32.mrb[4].mxu0 }
 0x33c   :  { %v3659_v51 = vadd.f32 %v385_v50, %v320_v48  ;;  %v387_v52 = vpop.f32.mrb[5].mxu0 }
 0x33d   :  { %v3661_v53 = vadd.f32 %v387_v52, %v324_v49  ;;  %v389_v54 = vpop.f32.mrb[6].mxu0 }
 0x33e   :  { %v477_v55 = vadd.f32 %v470_v37, %v3659_v51  ;;  %v390_v56 = vpop.f32.mrb[7].mxu0 }
 0x33f   :  { %v478_v57 = vadd.f32 %v472_v41, %v3661_v53 }
 0x340   :  { %v2604_v58 = vmul.f32 -1.442695, %v477_v55 }
 0x341   :  { %v2605_v59 = vmul.f32 -1.442695, %v478_v57 }
 0x342   :  { %2966 = vpow2.f32 %v2604_v58 }
 0x343   :  { %2968 = vpow2.f32 %v2605_v59 }
 0x34c   :  { %v2967_v60 = vpop.eup %2966 }
 0x34d   :  { %v2969_v61 = vpop.eup %2968  ;;  %v485_v63 = vadd.f32 1.0, %v2967_v60 }
 0x34e   :  { %v486_v62 = vadd.f32 1.0, %v2969_v61 }
 0x350   :  { %2970 = vrcp.f32 %v486_v62 }
 0x351   :  { %2972 = vrcp.f32 %v485_v63 }
 0x35a   :  { %v2971_v2 = vpop.eup %2970 }
 0x35b   :  { %v491_v3 = vmul.f32 2.0, %v2971_v2  ;;  %v2973_v5 = vpop.eup %2972 }
 0x35c   :  { %v493_v7 = vmul.f32 0.0, %v2973_v5 }
 0x35d   :  { %v2606_v4 = vadd.f32 -1.0, %v491_v3 }
 0x35f   :  { %v494_v6 = vmul.f32 %v2973_v5, %v2606_v4 }
 0x361   :  { %496 = vrot.lane.b32.xlu1 %v494_v6, %s3354_s24 }
 0x3d3   :  { %v497_v8 = vpop.permute.xlu1 %496 }
 0x3d4   :  { %v499_v9 = vadd.f32 %v497_v8, %v493_v7 }
 0x3d6   :  { %2974 = vtanh.f32 %v499_v9 }
 0x3e0   :  { %v2975_v10 = vpop.eup %2974 }
 0x3e1   :  { %v3666_v11 = vmul.f32 %v2975_v10, %v2971_v2 }
 0x3e3   :  { %v508_v12 = vpack.c.bf16 %v3666_v11, %v3666_v11 }
 0x3e5   :  { %510 = vrot.lane.b32.xlu0 %v508_v12, %s3354_s24 }
 0x457   :  { %v511_v13 = vpop.permute.xlu0 %510 }
 0x458   :  { %2607 = vmatmul.mubr.msk.bf16.vlgmr.msra.gmra.mrb[8].mxu0 %vm432_vm7, %v511_v13 }
 0x459   :  { %694 = vmatpush1.bf16.msra.mxu0 %v3596_v18  ;;  %725 = vmatprep.mubr.bf16.mxu0 %v3350_v0 }
 0x45a   :  { %695 = vmatprep.subr.bf16.mxu0 %v3601_v19 }
 0x45d   :  { %696 = vmatpush1.bf16.msra.mxu0 %v3607_v22 }
 0x45e   :  { %697 = vmatprep.subr.bf16.mxu0 %v3613_v24 }
 0x461   :  { %698 = vmatpush1.bf16.msra.mxu0 %v3619_v26 }
 0x462   :  { %699 = vmatprep.subr.bf16.mxu0 %v3625_v27 }
 0x465   :  { %700 = vmatpush1.bf16.msra.mxu0 %v3631_v28  ;;  %v579_v28 = vrot.slane %v499_v9, 6 }
 0x52b   :  { %v549_v14 = vpop.f32.mrb[8].mxu0 }
 0x52c   :  { %v558_v15 = vrot.slane %v549_v14, 6  ;;  %v551_v16 = vpop.f32.mrb[9].mxu0 }
 0x52d   :  { %v559_v17 = vrot.slane %v551_v16, 6  ;;  %v553_v20 = vpop.f32.mrb[10].mxu0 }
 0x52e   :  { %v562_v18 = vadd.f32 %v558_v15, %v3659_v51  ;;  %v554_v21 = vpop.f32.mrb[11].mxu0 }
 0x52f   :  { %v563_v19 = vadd.f32 %v559_v17, %v3661_v53 }
 0x530   :  { %v2608_v23 = vmul.f32 -1.442695, %v562_v18 }
 0x531   :  { %v2609_v22 = vmul.f32 -1.442695, %v563_v19 }
 0x532   :  { %2976 = vpow2.f32 %v2608_v23 }
 0x533   :  { %2978 = vpow2.f32 %v2609_v22 }
 0x53c   :  { %v2977_v24 = vpop.eup %2976 }
 0x53d   :  { %v2979_v25 = vpop.eup %2978  ;;  %v570_v26 = vadd.f32 1.0, %v2977_v24 }
 0x53e   :  { %v571_v27 = vadd.f32 1.0, %v2979_v25 }
 0x53f   :  { %2980 = vrcp.f32 %v570_v26 }
 0x540   :  { %2982 = vrcp.f32 %v571_v27 }
 0x549   :  { %v2981_v29 = vpop.eup %2980 }
 0x54a   :  { %v2983_v30 = vpop.eup %2982  ;;  %v581_v31 = vmul.f32 %v2981_v29, %v579_v28 }
 0x54b   :  { %v576_v32 = vmul.f32 2.0, %v2983_v30 }
 0x54d   :  { %v2610_v33 = vadd.f32 -1.0, %v576_v32 }
 0x54f   :  { %v582_v34 = vmul.f32 %v2981_v29, %v2610_v33 }
 0x551   :  { %584 = vrot.lane.b32.xlu1 %v582_v34, %s3354_s24  ;;  %v2880_v34 = vld [vmem:[%s4166_s6] ss:$8 sps:$4 sm:$0xff]  }
 0x5c3   :  { %v585_v35 = vpop.permute.xlu1 %584 }
 0x5c4   :  { %v587_v36 = vadd.f32 %v585_v35, %v581_v31  ;;  %v2882_v35 = vld [vmem:[%s4166_s6 + $0x4] ss:$8 sps:$4 sm:$0xff]  }
 0x5c5   :  { %847 = vmatprep.subr.bf16.mxu1 %v2882_v35 }
 0x5c6   :  { %2984 = vtanh.f32 %v587_v36  ;;  %v668_v60 = vrot.slane %v587_v36, 6  ;;  %v3718_v36 = vld [vmem:[%s4167_s7] ss:$8 sps:$4 sm:$0xff]  }
 0x5d0   :  { %v2985_v37 = vpop.eup %2984 }
 0x5d1   :  { %v3683_v38 = vmul.f32 %v2985_v37, %v2983_v30  ;;  %v3723_v37 = vld [vmem:[%s4167_s7 + $0x14] ss:$8 sps:$4 sm:$0xff]  }
 0x5d3   :  { %v596_v39 = vpack.c.bf16 %v3683_v38, %v3683_v38 }
 0x5d5   :  { %v598_v40 = vrot.slane %v596_v39, 1  ;;  %v2888_v39 = vld [vmem:[%s4166_s6 + $0x14] ss:$8 sps:$4 sm:$0xff]  }
 0x5d7   :  { %599 = vrot.lane.b32.xlu0 %v598_v40, %s3354_s24  ;;  %v3735_v40 = vld [vmem:[%s4167_s7 + $0x10] ss:$8 sps:$4 sm:$0xff]  }
 0x649   :  { %v600_v41 = vpop.permute.xlu0 %599 }
 0x64a   :  { %2611 = vmatmul.mubr.msk.bf16.vlgmr.msra.gmra.mrb[8].mxu1 %vm432_vm7, %v600_v41 }
 0x64b   :  { %879 = vmatprep.mubr.bf16.mxu1 %v3350_v0  ;;  %848 = vmatpush1.bf16.msra.mxu1 %v2880_v34 }
 0x64c   :  { %849 = vmatprep.subr.bf16.mxu1 %v2888_v39 }
 0x71d   :  { %v638_v42 = vpop.f32.mrb[8].mxu1 }
 0x71e   :  { %v647_v43 = vrot.slane %v638_v42, 4  ;;  %v640_v44 = vpop.f32.mrb[9].mxu1 }
 0x71f   :  { %v648_v47 = vrot.slane %v640_v44, 4  ;;  %v642_v48 = vpop.f32.mrb[10].mxu1  ;;  %v2894_v44 = vld [vmem:[%s4166_s6 + $0x24] ss:$8 sps:$4 sm:$0xff]  }
 0x720   :  { %v651_v49 = vadd.f32 %v647_v43, %v3659_v51  ;;  %v643_v50 = vpop.f32.mrb[11].mxu1  ;;  %v3745_v43 = vld [vmem:[%s4167_s7 + $0x24] ss:$8 sps:$4 sm:$0xff]  }
 0x721   :  { %v652_v52 = vadd.f32 %v648_v47, %v3661_v53  ;;  %v3753_v47 = vld [vmem:[%s4167_s7 + $0x20] ss:$8 sps:$4 sm:$0xff]   ;;  %v3764_v50 = vld [vmem:[%s4167_s7 + $0x34] ss:$8 sps:$4 sm:$0xff]  }
 0x722   :  { %v2612_v54 = vmul.f32 -1.442695, %v651_v49  ;;  %v2892_v49 = vld [vmem:[%s4166_s6 + $0x20] ss:$8 sps:$4 sm:$0xff]  }
 0x723   :  { %v2613_v55 = vmul.f32 -1.442695, %v652_v52  ;;  %v2900_v52 = vld [vmem:[%s4166_s6 + $0x34] ss:$8 sps:$4 sm:$0xff]  }
 0x724   :  { %2986 = vpow2.f32 %v2612_v54  ;;  %v3772_v54 = vld [vmem:[%s4167_s7 + $0x30] ss:$8 sps:$4 sm:$0xff]  }
 0x725   :  { %2988 = vpow2.f32 %v2613_v55  ;;  %v2898_v55 = vld [vmem:[%s4166_s6 + $0x30] ss:$8 sps:$4 sm:$0xff]  }
 0x72e   :  { %v2987_v56 = vpop.eup %2986 }
 0x72f   :  { %v2989_v57 = vpop.eup %2988  ;;  %v659_v58 = vadd.f32 1.0, %v2987_v56 }
 0x730   :  { %v660_v59 = vadd.f32 1.0, %v2989_v57 }
 0x731   :  { %2990 = vrcp.f32 %v659_v58 }
 0x732   :  { %2992 = vrcp.f32 %v660_v59 }
 0x73b   :  { %v2991_v61 = vpop.eup %2990 }
 0x73c   :  { %v2993_v62 = vpop.eup %2992  ;;  %v670_v63 = vmul.f32 %v2991_v61, %v668_v60 }
 0x73d   :  { %v665_v2 = vmul.f32 2.0, %v2993_v62 }
 0x73f   :  { %v2614_v3 = vadd.f32 -1.0, %v665_v2 }
 0x741   :  { %v671_v4 = vmul.f32 %v2991_v61, %v2614_v3  ;;  %v792_v3 = vld [vmem:[#allocation8] sm:$0x3] }
 0x743   :  { %673 = vrot.lane.b32.xlu1 %v671_v4, %s3354_s24  ;;  %v797_v4 = vrot.slane %v792_v3, %v3653_v45 }
 0x7b5   :  { %v674_v5 = vpop.permute.xlu1 %673 }
 0x7b6   :  { %v676_v6 = vadd.f32 %v674_v5, %v670_v63  ;;  %v801_v5 = vrot.slane %v792_v3, %v3655_v46 }
 0x7b8   :  { %2994 = vtanh.f32 %v676_v6  ;;  %v757_v28 = vrot.slane %v676_v6, 6 }
 0x7c2   :  { %v2995_v7 = vpop.eup %2994 }
 0x7c3   :  { %v678_v8 = vmul.f32 %v2995_v7, %v2993_v62 }
 0x7c5   :  { %v685_v9 = vpack.c.bf16 %v678_v8, %v678_v8 }
 0x7c7   :  { %v687_v10 = vrot.slane %v685_v9, 2 }
 0x7c9   :  { %688 = vrot.lane.b32.xlu0 %v687_v10, %s3354_s24 }
 0x7cd   :  { %503 = vrot.lane.b32.xlu0 %v3666_v11, %s3354_s24 }
 0x7d1   :  { %680 = vrot.lane.b32.xlu0 %v678_v8, %s3354_s24 }
 0x83b   :  { %v689_v12 = vpop.permute.xlu0 %688 }
 0x83c   :  { %2615 = vmatmul.mubr.msk.bf16.vlgmr.msra.gmra.mrb[12].mxu0 %vm432_vm7, %v689_v12 }
 0x83d   :  { %960 = vmatprep.mubr.bf16.mxu0 %v3350_v0 }
 0x83f   :  { %v504_v13 = vpop.permute.xlu0 %503 }
 0x840   :  { %507 = vst.msk [vmem:[#allocation2] sm:$0x3] %vm506_vm8, %v504_v13 }
 0x843   :  { %v681_v14 = vpop.permute.xlu0 %680 }
 0x844   :  { %684 = vst.msk [vmem:[#allocation2] sm:$0x30] %vm683_vm9, %v681_v14 }
 0x90f   :  { %v727_v15 = vpop.f32.mrb[12].mxu0 }
 0x910   :  { %v736_v16 = vrot.slane %v727_v15, 2  ;;  %v729_v17 = vpop.f32.mrb[13].mxu0 }
 0x911   :  { %v737_v20 = vrot.slane %v729_v17, 2  ;;  %v731_v11 = vpop.f32.mrb[14].mxu0 }
 0x912   :  { %v740_v18 = vadd.f32 %v736_v16, %v3659_v51  ;;  %v732_v21 = vpop.f32.mrb[15].mxu0 }
 0x913   :  { %v741_v19 = vadd.f32 %v737_v20, %v3661_v53  ;;  %v3707_v53 = vld [vmem:[%s4167_s7 + $0x4] ss:$8 sps:$4 sm:$0xff]  }
 0x914   :  { %v2616_v23 = vmul.f32 -1.442695, %v740_v18  ;;  %928 = vmatprep.subr.bf16.mxu0 %v3707_v53 }
 0x915   :  { %v2617_v22 = vmul.f32 -1.442695, %v741_v19  ;;  %929 = vmatpush1.bf16.msra.mxu0 %v3718_v36 }
 0x916   :  { %2996 = vpow2.f32 %v2616_v23  ;;  %930 = vmatprep.subr.bf16.mxu0 %v3723_v37 }
 0x917   :  { %2998 = vpow2.f32 %v2617_v22 }
 0x919   :  { %931 = vmatpush1.bf16.msra.mxu0 %v3735_v40 }
 0x91a   :  { %932 = vmatprep.subr.bf16.mxu0 %v3745_v43 }
 0x91d   :  { %933 = vmatpush1.bf16.msra.mxu0 %v3753_v47 }
 0x91e   :  { %934 = vmatprep.subr.bf16.mxu0 %v3764_v50 }
 0x920   :  { %v2997_v24 = vpop.eup %2996 }
 0x921   :  { %v2999_v25 = vpop.eup %2998  ;;  %v748_v26 = vadd.f32 1.0, %v2997_v24  ;;  %935 = vmatpush1.bf16.msra.mxu0 %v3772_v54 }
 0x922   :  { %v749_v27 = vadd.f32 1.0, %v2999_v25  ;;  %1094 = vmatprep.subr.bf16.mxu0 %v3707_v53 }
 0x923   :  { %3000 = vrcp.f32 %v748_v26 }
 0x924   :  { %3002 = vrcp.f32 %v749_v27  ;;  %961 = vmatmul.mubr.bf16.vlgmr.msra.gmra.mrb[16].mxu0 %v3350_v0 }
 0x925   :  { %1095 = vmatpush1.bf16.msra.mxu0 %v3718_v36  ;;  %1126 = vmatprep.mubr.bf16.mxu0 %v3350_v0 }
 0x926   :  { %1096 = vmatprep.subr.bf16.mxu0 %v3723_v37 }
 0x929   :  { %1097 = vmatpush1.bf16.msra.mxu0 %v3735_v40 }
 0x92a   :  { %1098 = vmatprep.subr.bf16.mxu0 %v3745_v43 }
 0x92d   :  { %v3001_v29 = vpop.eup %3000  ;;  %1099 = vmatpush1.bf16.msra.mxu0 %v3753_v47 }
 0x92e   :  { %v3003_v30 = vpop.eup %3002  ;;  %v759_v31 = vmul.f32 %v3001_v29, %v757_v28  ;;  %1100 = vmatprep.subr.bf16.mxu0 %v3764_v50 }
 0x92f   :  { %v754_v32 = vmul.f32 2.0, %v3003_v30 }
 0x931   :  { %v2618_v33 = vadd.f32 -1.0, %v754_v32  ;;  %1101 = vmatpush1.bf16.msra.mxu0 %v3772_v54 }
 0x933   :  { %v760_v51 = vmul.f32 %v3001_v29, %v2618_v33 }
 0x935   :  { %762 = vrot.lane.b32.xlu1 %v760_v51, %s3354_s24 }
 0x939   :  { %591 = vrot.lane.b32.xlu1 %v3683_v38, %s3354_s24  ;;  %v2886_v38 = vld [vmem:[%s4166_s6 + $0x10] ss:$8 sps:$4 sm:$0xff]  }
 0x93a   :  { %850 = vmatpush1.bf16.msra.mxu1 %v2886_v38 }
 0x93b   :  { %851 = vmatprep.subr.bf16.mxu1 %v2894_v44 }
 0x93e   :  { %852 = vmatpush1.bf16.msra.mxu1 %v2892_v49 }
 0x93f   :  { %853 = vmatprep.subr.bf16.mxu1 %v2900_v52 }
 0x942   :  { %854 = vmatpush1.bf16.msra.mxu1 %v2898_v55 }
 0x943   :  { %1006 = vmatprep.subr.bf16.mxu1 %v3707_v53 }
 0x9a7   :  { %v763_v41 = vpop.permute.xlu1 %762 }
 0x9a8   :  { %v765_v42 = vadd.f32 %v763_v41, %v759_v31 }
 0x9aa   :  { %3004 = vtanh.f32 %v765_v42 }
 0x9ab   :  { %v592_v48 = vpop.permute.xlu1 %591 }
 0x9ac   :  { %595 = vst.msk [vmem:[#allocation2] sm:$0xc] %vm594_vm10, %v592_v48 }
 0x9b4   :  { %v3005_v56 = vpop.eup %3004 }
 0x9b5   :  { %v767_v57 = vmul.f32 %v3005_v56, %v3003_v30 }
 0x9b7   :  { %769 = vrot.lane.b32.xlu1 %v767_v57, %s3354_s24 }
 0x9f7   :  { %v962_v61 = vpop.f32.mrb[16].mxu0 }
 0x9f8   :  { %v964_v62 = vpop.f32.mrb[17].mxu0 }
 0x9f9   :  { %v966_v63 = vpop.f32.mrb[18].mxu0 }
 0x9fa   :  { %v967_v2 = vpop.f32.mrb[19].mxu0 }
 0xa29   :  { %v770_v58 = vpop.permute.xlu1 %769 }
 0xa2a   :  { %773 = vst.msk [vmem:[#allocation2] sm:$0xc0] %vm772_vm11, %v770_v58 }
 0xa31   :  { %v774_v59 = vld [vmem:[#allocation2] sm:$0xff] }
 0xa32   :  { %v775_v60 = vpack.c.bf16 %v774_v59, %v774_v59 }
 0xa34   :  { %2627 = vmatmul.mubr.msk.bf16.vlgmr.msra.gmra.mrb[12].mxu1 %vm432_vm7, %v775_v60 }
 0xa35   :  { %1007 = vmatpush1.bf16.msra.mxu1 %v3718_v36  ;;  %1038 = vmatprep.mubr.bf16.mxu1 %v3350_v0 }
 0xa36   :  { %1008 = vmatprep.subr.bf16.mxu1 %v3723_v37 }
 0xa39   :  { %1009 = vmatpush1.bf16.msra.mxu1 %v3735_v40 }
 0xa3a   :  { %1010 = vmatprep.subr.bf16.mxu1 %v3745_v43 }
 0xa3d   :  { %1011 = vmatpush1.bf16.msra.mxu1 %v3753_v47 }
 0xa3e   :  { %1012 = vmatprep.subr.bf16.mxu1 %v3764_v50 }
 0xa41   :  { %1013 = vmatpush1.bf16.msra.mxu1 %v3772_v54 }
 0xa42   :  { %1182 = vmatprep.subr.bf16.mxu1 %v3707_v53 }
 0xb07   :  { %v881_v6 = vpop.f32.mrb[12].mxu1 }
 0xb08   :  { %v3804_v7 = vadd.f32 %v881_v6, %v797_v4  ;;  %v883_v8 = vpop.f32.mrb[13].mxu1 }
 0xb09   :  { %v3806_v9 = vadd.f32 %v883_v8, %v801_v5  ;;  %v885_v10 = vpop.f32.mrb[14].mxu1 }
 0xb0a   :  { %v969_v12 = vadd.f32 %v962_v61, %v3804_v7  ;;  %v886_v13 = vpop.f32.mrb[15].mxu1 }
 0xb0b   :  { %v970_v14 = vadd.f32 %v964_v62, %v3806_v9 }
 0xb0c   :  { %v2636_v15 = vmul.f32 -1.442695, %v969_v12 }
 0xb0d   :  { %v2637_v16 = vmul.f32 -1.442695, %v970_v14 }
 0xb0e   :  { %3006 = vpow2.f32 %v2636_v15 }
 0xb0f   :  { %3008 = vpow2.f32 %v2637_v16 }
 0xb18   :  { %v3007_v17 = vpop.eup %3006 }
 0xb19   :  { %v3009_v20 = vpop.eup %3008  ;;  %v977_v18 = vadd.f32 1.0, %v3007_v17 }
 0xb1a   :  { %v978_v11 = vadd.f32 1.0, %v3009_v20 }
 0xb1c   :  { %3010 = vrcp.f32 %v978_v11 }
 0xb1d   :  { %3012 = vrcp.f32 %v977_v18 }
 0xb26   :  { %v3011_v21 = vpop.eup %3010 }
 0xb27   :  { %v983_v19 = vmul.f32 2.0, %v3011_v21  ;;  %v3013_v22 = vpop.eup %3012 }
 0xb28   :  { %v985_v25 = vmul.f32 0.0, %v3013_v22 }
 0xb29   :  { %v2638_v23 = vadd.f32 -1.0, %v983_v19 }
 0xb2b   :  { %v986_v24 = vmul.f32 %v3013_v22, %v2638_v23 }
 0xb2d   :  { %988 = vrot.lane.b32.xlu0 %v986_v24, %s3354_s24 }
 0xb9f   :  { %v989_v26 = vpop.permute.xlu0 %988 }
 0xba0   :  { %v991_v27 = vadd.f32 %v989_v26, %v985_v25 }
 0xba2   :  { %3014 = vtanh.f32 %v991_v27  ;;  %v1070_v44 = vrot.slane %v991_v27, 6 }
 0xbac   :  { %v3015_v28 = vpop.eup %3014 }
 0xbad   :  { %v3811_v29 = vmul.f32 %v3015_v28, %v3011_v21 }
 0xbaf   :  { %v999_v30 = vpack.c.bf16 %v3811_v29, %v3811_v29 }
 0xbb1   :  { %1001 = vrot.lane.b32.xlu1 %v999_v30, %s3354_s24 }
 0xc23   :  { %v1002_v31 = vpop.permute.xlu1 %1001 }
 0xc24   :  { %2639 = vmatmul.mubr.msk.bf16.vlgmr.msra.gmra.mrb[16].mxu1 %vm432_vm7, %v1002_v31 }
 0xc25   :  { %1183 = vmatpush1.bf16.msra.mxu1 %v3718_v36  ;;  %1214 = vmatprep.mubr.bf16.mxu1 %v3350_v0 }
 0xc26   :  { %1184 = vmatprep.subr.bf16.mxu1 %v3723_v37 }
 0xc29   :  { %1185 = vmatpush1.bf16.msra.mxu1 %v3735_v40 }
 0xc2a   :  { %1186 = vmatprep.subr.bf16.mxu1 %v3745_v43 }
 0xc2d   :  { %1187 = vmatpush1.bf16.msra.mxu1 %v3753_v47 }
 0xc2e   :  { %1188 = vmatprep.subr.bf16.mxu1 %v3764_v50 }
 0xc31   :  { %1189 = vmatpush1.bf16.msra.mxu1 %v3772_v54 }
 0xcf7   :  { %v1040_v32 = vpop.f32.mrb[16].mxu1 }
 0xcf8   :  { %v1049_v33 = vrot.slane %v1040_v32, 6  ;;  %v1042_v51 = vpop.f32.mrb[17].mxu1 }
 0xcf9   :  { %v1050_v53 = vrot.slane %v1042_v51, 6  ;;  %v1044_v34 = vpop.f32.mrb[18].mxu1 }
 0xcfa   :  { %v1053_v35 = vadd.f32 %v1049_v33, %v3804_v7  ;;  %v1045_v36 = vpop.f32.mrb[19].mxu1 }
 0xcfb   :  { %v1054_v37 = vadd.f32 %v1050_v53, %v3806_v9 }
 0xcfc   :  { %v2640_v39 = vmul.f32 -1.442695, %v1053_v35 }
 0xcfd   :  { %v2641_v40 = vmul.f32 -1.442695, %v1054_v37 }
 0xcfe   :  { %3016 = vpow2.f32 %v2640_v39 }
 0xcff   :  { %3018 = vpow2.f32 %v2641_v40 }
 0xd08   :  { %v3017_v38 = vpop.eup %3016 }
 0xd09   :  { %v3019_v41 = vpop.eup %3018  ;;  %v1061_v42 = vadd.f32 1.0, %v3017_v38 }
 0xd0a   :  { %v1062_v43 = vadd.f32 1.0, %v3019_v41 }
 0xd0b   :  { %3020 = vrcp.f32 %v1061_v42 }
 0xd0c   :  { %3022 = vrcp.f32 %v1062_v43 }
 0xd15   :  { %v3021_v47 = vpop.eup %3020 }
 0xd16   :  { %v3023_v48 = vpop.eup %3022  ;;  %v1072_v49 = vmul.f32 %v3021_v47, %v1070_v44 }
 0xd17   :  { %v1067_v50 = vmul.f32 2.0, %v3023_v48 }
 0xd19   :  { %v2642_v52 = vadd.f32 -1.0, %v1067_v50 }
 0xd1b   :  { %v1073_v54 = vmul.f32 %v3021_v47, %v2642_v52 }
 0xd1d   :  { %1075 = vrot.lane.b32.xlu0 %v1073_v54, %s3354_s24  ;;  %v2904_v54 = vld [vmem:[#allocation9] ss:$8 sps:$4 sm:$0xff]  }
 0xd8f   :  { %v1076_v55 = vpop.permute.xlu0 %1075 }
 0xd90   :  { %v1078_v56 = vadd.f32 %v1076_v55, %v1072_v49  ;;  %v2906_v55 = vld [vmem:[#allocation9 + $0x4] ss:$8 sps:$4 sm:$0xff]  }
 0xd91   :  { %1335 = vmatprep.subr.bf16.mxu0 %v2906_v55 }
 0xd92   :  { %3024 = vtanh.f32 %v1078_v56  ;;  %v1158_v17 = vrot.slane %v1078_v56, 6  ;;  %v3851_v56 = vld [vmem:[#allocation11] ss:$8 sps:$4 sm:$0xff]  }
 0xd9c   :  { %v3025_v57 = vpop.eup %3024 }
 0xd9d   :  { %v3828_v58 = vmul.f32 %v3025_v57, %v3023_v48  ;;  %v3853_v57 = vld [vmem:[#allocation11 + $0x14] ss:$8 sps:$4 sm:$0xff]  }
 0xd9f   :  { %v1086_v59 = vpack.c.bf16 %v3828_v58, %v3828_v58 }
 0xda1   :  { %v1088_v60 = vrot.slane %v1086_v59, 1  ;;  %v2912_v59 = vld [vmem:[#allocation9 + $0x14] ss:$8 sps:$4 sm:$0xff]  }
 0xda3   :  { %1089 = vrot.lane.b32.xlu1 %v1088_v60, %s3354_s24  ;;  %v3859_v60 = vld [vmem:[#allocation11 + $0x10] ss:$8 sps:$4 sm:$0xff]  }
 0xe15   :  { %v1090_v61 = vpop.permute.xlu1 %1089 }
 0xe16   :  { %2643 = vmatmul.mubr.msk.bf16.vlgmr.msra.gmra.mrb[20].mxu0 %vm432_vm7, %v1090_v61  ;;  %v2910_v61 = vld [vmem:[#allocation9 + $0x10] ss:$8 sps:$4 sm:$0xff]  }
 0xe17   :  { %1367 = vmatprep.mubr.bf16.mxu0 %v3350_v0  ;;  %1336 = vmatpush1.bf16.msra.mxu0 %v2904_v54 }
 0xe18   :  { %1337 = vmatprep.subr.bf16.mxu0 %v2912_v59 }
 0xe1b   :  { %1338 = vmatpush1.bf16.msra.mxu0 %v2910_v61 }
 0xee9   :  { %v1128_v62 = vpop.f32.mrb[20].mxu0 }
 0xeea   :  { %v1137_v63 = vrot.slane %v1128_v62, 4  ;;  %v1130_v2 = vpop.f32.mrb[21].mxu0 }
 0xeeb   :  { %v1138_v3 = vrot.slane %v1130_v2, 4  ;;  %v1132_v4 = vpop.f32.mrb[22].mxu0  ;;  %v3863_v2 = vld [vmem:[#allocation11 + $0x24] ss:$8 sps:$4 sm:$0xff]  }
 0xeec   :  { %v1141_v5 = vadd.f32 %v1137_v63, %v3804_v7  ;;  %v1133_v6 = vpop.f32.mrb[23].mxu0  ;;  %v3865_v4 = vld [vmem:[#allocation11 + $0x20] ss:$8 sps:$4 sm:$0xff]  }
 0xeed   :  { %v1142_v8 = vadd.f32 %v1138_v3, %v3806_v9  ;;  %v2918_v3 = vld [vmem:[#allocation9 + $0x24] ss:$8 sps:$4 sm:$0xff]   ;;  %v3868_v6 = vld [vmem:[#allocation11 + $0x34] ss:$8 sps:$4 sm:$0xff]  }
 0xeee   :  { %v2644_v10 = vmul.f32 -1.442695, %v1141_v5  ;;  %1339 = vmatprep.subr.bf16.mxu0 %v2918_v3 }
 0xeef   :  { %v2645_v12 = vmul.f32 -1.442695, %v1142_v8  ;;  %v2924_v8 = vld [vmem:[#allocation9 + $0x34] ss:$8 sps:$4 sm:$0xff]  }
 0xef0   :  { %3026 = vpow2.f32 %v2644_v10  ;;  %v3872_v10 = vld [vmem:[#allocation11 + $0x30] ss:$8 sps:$4 sm:$0xff]  }
 0xef1   :  { %3028 = vpow2.f32 %v2645_v12  ;;  %v2922_v12 = vld [vmem:[#allocation9 + $0x30] ss:$8 sps:$4 sm:$0xff]  }
 0xefa   :  { %v3027_v13 = vpop.eup %3026 }
 0xefb   :  { %v3029_v14 = vpop.eup %3028  ;;  %v1149_v15 = vadd.f32 1.0, %v3027_v13 }
 0xefc   :  { %v1150_v16 = vadd.f32 1.0, %v3029_v14 }
 0xefd   :  { %3030 = vrcp.f32 %v1149_v15 }
 0xefe   :  { %3032 = vrcp.f32 %v1150_v16 }
 0xf07   :  { %v3031_v20 = vpop.eup %3030 }
 0xf08   :  { %v3033_v11 = vpop.eup %3032  ;;  %v1160_v18 = vmul.f32 %v3031_v20, %v1158_v17 }
 0xf09   :  { %v1155_v21 = vmul.f32 2.0, %v3033_v11 }
 0xf0b   :  { %v2646_v19 = vadd.f32 -1.0, %v1155_v21 }
 0xf0d   :  { %v1161_v23 = vmul.f32 %v3031_v20, %v2646_v19  ;;  %v1280_v19 = vld [vmem:[#allocation12] sm:$0x3] }
 0xf0f   :  { %1163 = vrot.lane.b32.xlu0 %v1161_v23, %s3354_s24  ;;  %v1285_v23 = vrot.slane %v1280_v19, %v3653_v45 }
 0xf81   :  { %v1164_v22 = vpop.permute.xlu0 %1163 }
 0xf82   :  { %v1166_v24 = vadd.f32 %v1164_v22, %v1160_v18  ;;  %v1289_v22 = vrot.slane %v1280_v19, %v3655_v46 }
 0xf84   :  { %3034 = vtanh.f32 %v1166_v24  ;;  %v1246_v44 = vrot.slane %v1166_v24, 6 }
 0xf8e   :  { %v3035_v25 = vpop.eup %3034 }
 0xf8f   :  { %v1168_v26 = vmul.f32 %v3035_v25, %v3033_v11 }
 0xf91   :  { %v1174_v27 = vpack.c.bf16 %v1168_v26, %v1168_v26 }
 0xf93   :  { %v1176_v28 = vrot.slane %v1174_v27, 2 }
 0xf95   :  { %1177 = vrot.lane.b32.xlu1 %v1176_v28, %s3354_s24 }
 0xf99   :  { %995 = vrot.lane.b32.xlu1 %v3811_v29, %s3354_s24 }
 0xf9d   :  { %1170 = vrot.lane.b32.xlu1 %v1168_v26, %s3354_s24 }
0x1007   :  { %v1178_v30 = vpop.permute.xlu1 %1177 }
0x1008   :  { %2647 = vmatmul.mubr.msk.bf16.vlgmr.msra.gmra.mrb[20].mxu1 %vm432_vm7, %v1178_v30 }
0x1009   :  { %1448 = vmatprep.mubr.bf16.mxu1 %v3350_v0 }
0x100b   :  { %v996_v31 = vpop.permute.xlu1 %995 }
0x100c   :  { %998 = vst.msk [vmem:[#allocation2] sm:$0x3] %vm506_vm8, %v996_v31 }
0x100f   :  { %v1171_v32 = vpop.permute.xlu1 %1170 }
0x1010   :  { %1173 = vst.msk [vmem:[#allocation2] sm:$0x30] %vm683_vm9, %v1171_v32 }
0x10db   :  { %v1216_v33 = vpop.f32.mrb[20].mxu1 }
0x10dc   :  { %v1225_v51 = vrot.slane %v1216_v33, 2  ;;  %v1218_v53 = vpop.f32.mrb[21].mxu1 }
0x10dd   :  { %v1226_v34 = vrot.slane %v1218_v53, 2  ;;  %v1220_v35 = vpop.f32.mrb[22].mxu1 }
0x10de   :  { %v1229_v29 = vadd.f32 %v1225_v51, %v3804_v7  ;;  %v1221_v36 = vpop.f32.mrb[23].mxu1 }
0x10df   :  { %v1230_v37 = vadd.f32 %v1226_v34, %v3806_v9  ;;  %v3849_v9 = vld [vmem:[#allocation11 + $0x4] ss:$8 sps:$4 sm:$0xff]  }
0x10e0   :  { %v2648_v39 = vmul.f32 -1.442695, %v1229_v29  ;;  %1416 = vmatprep.subr.bf16.mxu1 %v3849_v9 }
0x10e1   :  { %v2649_v40 = vmul.f32 -1.442695, %v1230_v37  ;;  %1417 = vmatpush1.bf16.msra.mxu1 %v3851_v56 }
0x10e2   :  { %3036 = vpow2.f32 %v2648_v39  ;;  %1418 = vmatprep.subr.bf16.mxu1 %v3853_v57 }
0x10e3   :  { %3038 = vpow2.f32 %v2649_v40 }
0x10e5   :  { %1419 = vmatpush1.bf16.msra.mxu1 %v3859_v60 }
0x10e6   :  { %1420 = vmatprep.subr.bf16.mxu1 %v3863_v2 }
0x10e9   :  { %1421 = vmatpush1.bf16.msra.mxu1 %v3865_v4 }
0x10ea   :  { %1422 = vmatprep.subr.bf16.mxu1 %v3868_v6 }
0x10ec   :  { %v3037_v38 = vpop.eup %3036 }
0x10ed   :  { %v3039_v41 = vpop.eup %3038  ;;  %v1237_v42 = vadd.f32 1.0, %v3037_v38  ;;  %1423 = vmatpush1.bf16.msra.mxu1 %v3872_v10 }
0x10ee   :  { %v1238_v43 = vadd.f32 1.0, %v3039_v41  ;;  %1582 = vmatprep.subr.bf16.mxu1 %v3849_v9 }
0x10ef   :  { %3040 = vrcp.f32 %v1237_v42 }
0x10f0   :  { %3042 = vrcp.f32 %v1238_v43  ;;  %1449 = vmatmul.mubr.bf16.vlgmr.msra.gmra.mrb[24].mxu1 %v3350_v0 }
0x10f1   :  { %1583 = vmatpush1.bf16.msra.mxu1 %v3851_v56  ;;  %1614 = vmatprep.mubr.bf16.mxu1 %v3350_v0 }
0x10f2   :  { %1584 = vmatprep.subr.bf16.mxu1 %v3853_v57 }
0x10f5   :  { %1585 = vmatpush1.bf16.msra.mxu1 %v3859_v60 }
0x10f6   :  { %1586 = vmatprep.subr.bf16.mxu1 %v3863_v2 }
0x10f9   :  { %v3041_v47 = vpop.eup %3040  ;;  %1587 = vmatpush1.bf16.msra.mxu1 %v3865_v4 }
0x10fa   :  { %v3043_v48 = vpop.eup %3042  ;;  %v1248_v49 = vmul.f32 %v3041_v47, %v1246_v44  ;;  %1588 = vmatprep.subr.bf16.mxu1 %v3868_v6 }
0x10fb   :  { %v1243_v50 = vmul.f32 2.0, %v3043_v48 }
0x10fd   :  { %v2650_v52 = vadd.f32 -1.0, %v1243_v50  ;;  %1589 = vmatpush1.bf16.msra.mxu1 %v3872_v10 }
0x10ff   :  { %v1249_v7 = vmul.f32 %v3041_v47, %v2650_v52 }
0x1101   :  { %1251 = vrot.lane.b32.xlu0 %v1249_v7, %s3354_s24 }
0x1105   :  { %1082 = vrot.lane.b32.xlu0 %v3828_v58, %s3354_s24  ;;  %v2916_v58 = vld [vmem:[#allocation9 + $0x20] ss:$8 sps:$4 sm:$0xff]  }
0x1106   :  { %1340 = vmatpush1.bf16.msra.mxu0 %v2916_v58 }
0x1107   :  { %1341 = vmatprep.subr.bf16.mxu0 %v2924_v8 }
0x110a   :  { %1342 = vmatpush1.bf16.msra.mxu0 %v2922_v12 }
0x110b   :  { %1494 = vmatprep.subr.bf16.mxu0 %v3849_v9 }
0x1173   :  { %v1252_v62 = vpop.permute.xlu0 %1251 }
0x1174   :  { %v1254_v63 = vadd.f32 %v1252_v62, %v1248_v49 }
0x1176   :  { %3044 = vtanh.f32 %v1254_v63 }
0x1177   :  { %v1083_v5 = vpop.permute.xlu0 %1082 }
0x1178   :  { %1085 = vst.msk [vmem:[#allocation2] sm:$0xc] %vm594_vm10, %v1083_v5 }
0x1180   :  { %v3045_v13 = vpop.eup %3044 }
0x1181   :  { %v1256_v14 = vmul.f32 %v3045_v13, %v3043_v48 }
0x1183   :  { %1258 = vrot.lane.b32.xlu0 %v1256_v14, %s3354_s24 }
0x11c3   :  { %v1450_v20 = vpop.f32.mrb[24].mxu1 }
0x11c4   :  { %v1452_v11 = vpop.f32.mrb[25].mxu1 }
0x11c5   :  { %v1454_v18 = vpop.f32.mrb[26].mxu1 }
0x11c6   :  { %v1455_v21 = vpop.f32.mrb[27].mxu1 }
0x11f5   :  { %v1259_v15 = vpop.permute.xlu0 %1258 }
0x11f6   :  { %1261 = vst.msk [vmem:[#allocation2] sm:$0xc0] %vm772_vm11, %v1259_v15 }
0x11fd   :  { %v1262_v16 = vld [vmem:[#allocation2] sm:$0xff] }
0x11fe   :  { %v1263_v17 = vpack.c.bf16 %v1262_v16, %v1262_v16 }
0x1200   :  { %2659 = vmatmul.mubr.msk.bf16.vlgmr.msra.gmra.mrb[24].mxu0 %vm432_vm7, %v1263_v17 }
0x1201   :  { %1495 = vmatpush1.bf16.msra.mxu0 %v3851_v56  ;;  %1526 = vmatprep.mubr.bf16.mxu0 %v3350_v0 }
0x1202   :  { %1496 = vmatprep.subr.bf16.mxu0 %v3853_v57 }
0x1205   :  { %1497 = vmatpush1.bf16.msra.mxu0 %v3859_v60 }
0x1206   :  { %1498 = vmatprep.subr.bf16.mxu0 %v3863_v2 }
0x1209   :  { %1499 = vmatpush1.bf16.msra.mxu0 %v3865_v4 }
0x120a   :  { %1500 = vmatprep.subr.bf16.mxu0 %v3868_v6 }
0x120d   :  { %1501 = vmatpush1.bf16.msra.mxu0 %v3872_v10 }
0x120e   :  { %1670 = vmatprep.subr.bf16.mxu0 %v3849_v9 }
0x12d3   :  { %v1369_v24 = vpop.f32.mrb[24].mxu0 }
0x12d4   :  { %v3901_v25 = vadd.f32 %v1369_v24, %v1285_v23  ;;  %v1371_v26 = vpop.f32.mrb[25].mxu0 }
0x12d5   :  { %v3903_v27 = vadd.f32 %v1371_v26, %v1289_v22  ;;  %v1373_v28 = vpop.f32.mrb[26].mxu0 }
0x12d6   :  { %v1457_v30 = vadd.f32 %v1450_v20, %v3901_v25  ;;  %v1374_v31 = vpop.f32.mrb[27].mxu0 }
0x12d7   :  { %v1458_v32 = vadd.f32 %v1452_v11, %v3903_v27 }
0x12d8   :  { %v2668_v33 = vmul.f32 -1.442695, %v1457_v30 }
0x12d9   :  { %v2669_v51 = vmul.f32 -1.442695, %v1458_v32 }
0x12da   :  { %3046 = vpow2.f32 %v2668_v33 }
0x12db   :  { %3048 = vpow2.f32 %v2669_v51 }
0x12e4   :  { %v3047_v53 = vpop.eup %3046 }
0x12e5   :  { %v3049_v34 = vpop.eup %3048  ;;  %v1465_v29 = vadd.f32 1.0, %v3047_v53 }
0x12e6   :  { %v1466_v35 = vadd.f32 1.0, %v3049_v34 }
0x12e8   :  { %3050 = vrcp.f32 %v1466_v35 }
0x12e9   :  { %3052 = vrcp.f32 %v1465_v29 }
0x12f2   :  { %v3051_v36 = vpop.eup %3050 }
0x12f3   :  { %v1471_v37 = vmul.f32 2.0, %v3051_v36  ;;  %v3053_v40 = vpop.eup %3052 }
0x12f4   :  { %v1473_v41 = vmul.f32 0.0, %v3053_v40 }
0x12f5   :  { %v2670_v39 = vadd.f32 -1.0, %v1471_v37 }
0x12f7   :  { %v1474_v38 = vmul.f32 %v3053_v40, %v2670_v39 }
0x12f9   :  { %1476 = vrot.lane.b32.xlu1 %v1474_v38, %s3354_s24 }
0x136b   :  { %v1477_v42 = vpop.permute.xlu1 %1476 }
0x136c   :  { %v1479_v43 = vadd.f32 %v1477_v42, %v1473_v41 }
0x136e   :  { %3054 = vtanh.f32 %v1479_v43  ;;  %v1558_v58 = vrot.slane %v1479_v43, 6 }
0x1378   :  { %v3055_v44 = vpop.eup %3054 }
0x1379   :  { %v3908_v47 = vmul.f32 %v3055_v44, %v3051_v36 }
0x137b   :  { %v1487_v48 = vpack.c.bf16 %v3908_v47, %v3908_v47 }
0x137d   :  { %1489 = vrot.lane.b32.xlu0 %v1487_v48, %s3354_s24 }
0x13ef   :  { %v1490_v49 = vpop.permute.xlu0 %1489 }
0x13f0   :  { %2671 = vmatmul.mubr.msk.bf16.vlgmr.msra.gmra.mrb[28].mxu0 %vm432_vm7, %v1490_v49 }
0x13f1   :  { %1671 = vmatpush1.bf16.msra.mxu0 %v3851_v56  ;;  %1702 = vmatprep.mubr.bf16.mxu0 %v3350_v0 }
0x13f2   :  { %1672 = vmatprep.subr.bf16.mxu0 %v3853_v57 }
0x13f5   :  { %1673 = vmatpush1.bf16.msra.mxu0 %v3859_v60 }
0x13f6   :  { %1674 = vmatprep.subr.bf16.mxu0 %v3863_v2 }
0x13f9   :  { %1675 = vmatpush1.bf16.msra.mxu0 %v3865_v4 }
0x13fa   :  { %1676 = vmatprep.subr.bf16.mxu0 %v3868_v6 }
0x13fd   :  { %1677 = vmatpush1.bf16.msra.mxu0 %v3872_v10 }
0x14c3   :  { %v1528_v50 = vpop.f32.mrb[28].mxu0 }
0x14c4   :  { %v1537_v52 = vrot.slane %v1528_v50, 6  ;;  %v1530_v7 = vpop.f32.mrb[29].mxu0 }
0x14c5   :  { %v1538_v9 = vrot.slane %v1530_v7, 6  ;;  %v1532_v54 = vpop.f32.mrb[30].mxu0 }
0x14c6   :  { %v1541_v55 = vadd.f32 %v1537_v52, %v3901_v25  ;;  %v1533_v56 = vpop.f32.mrb[31].mxu0 }
0x14c7   :  { %v1542_v57 = vadd.f32 %v1538_v9, %v3903_v27 }
0x14c8   :  { %v2672_v59 = vmul.f32 -1.442695, %v1541_v55 }
0x14c9   :  { %v2673_v60 = vmul.f32 -1.442695, %v1542_v57 }
0x14ca   :  { %3056 = vpow2.f32 %v2672_v59 }
0x14cb   :  { %3058 = vpow2.f32 %v2673_v60 }
0x14d4   :  { %v3057_v61 = vpop.eup %3056 }
0x14d5   :  { %v3059_v62 = vpop.eup %3058  ;;  %v1549_v63 = vadd.f32 1.0, %v3057_v61 }
0x14d6   :  { %v1550_v2 = vadd.f32 1.0, %v3059_v62 }
0x14d7   :  { %3060 = vrcp.f32 %v1549_v63 }
0x14d8   :  { %3062 = vrcp.f32 %v1550_v2 }
0x14e1   :  { %v3061_v3 = vpop.eup %3060 }
0x14e2   :  { %v3063_v4 = vpop.eup %3062  ;;  %v1560_v5 = vmul.f32 %v3061_v3, %v1558_v58 }
0x14e3   :  { %v1555_v6 = vmul.f32 2.0, %v3063_v4 }
0x14e5   :  { %v2674_v8 = vadd.f32 -1.0, %v1555_v6 }
0x14e7   :  { %v1561_v10 = vmul.f32 %v3061_v3, %v2674_v8 }
0x14e9   :  { %1563 = vrot.lane.b32.xlu1 %v1561_v10, %s3354_s24  ;;  %v2928_v10 = vld [vmem:[%s4172_s12] ss:$8 sps:$4 sm:$0xff]  }
0x155b   :  { %v1564_v12 = vpop.permute.xlu1 %1563 }
0x155c   :  { %v1566_v13 = vadd.f32 %v1564_v12, %v1560_v5  ;;  %v2930_v12 = vld [vmem:[%s4172_s12 + $0x4] ss:$8 sps:$4 sm:$0xff]  }
0x155d   :  { %1823 = vmatprep.subr.bf16.mxu1 %v2930_v12 }
0x155e   :  { %3064 = vtanh.f32 %v1566_v13  ;;  %v1646_v53 = vrot.slane %v1566_v13, 6  ;;  %v3954_v13 = vld [vmem:[#allocation14] ss:$8 sps:$4 sm:$0xff]  }
0x1568   :  { %v3065_v14 = vpop.eup %3064 }
0x1569   :  { %v3925_v15 = vmul.f32 %v3065_v14, %v3063_v4  ;;  %v3956_v14 = vld [vmem:[#allocation14 + $0x14] ss:$8 sps:$4 sm:$0xff]  }
0x156b   :  { %v1574_v16 = vpack.c.bf16 %v3925_v15, %v3925_v15 }
0x156d   :  { %v1576_v17 = vrot.slane %v1574_v16, 1  ;;  %v2936_v16 = vld [vmem:[%s4172_s12 + $0x14] ss:$8 sps:$4 sm:$0xff]  }
0x156f   :  { %1577 = vrot.lane.b32.xlu0 %v1576_v17, %s3354_s24  ;;  %v3965_v17 = vld [vmem:[#allocation14 + $0x10] ss:$8 sps:$4 sm:$0xff]  }
0x15e1   :  { %v1578_v20 = vpop.permute.xlu0 %1577 }
0x15e2   :  { %2675 = vmatmul.mubr.msk.bf16.vlgmr.msra.gmra.mrb[28].mxu1 %vm432_vm7, %v1578_v20  ;;  %v2934_v20 = vld [vmem:[%s4172_s12 + $0x10] ss:$8 sps:$4 sm:$0xff]  }
0x15e3   :  { %1855 = vmatprep.mubr.bf16.mxu1 %v3350_v0  ;;  %1824 = vmatpush1.bf16.msra.mxu1 %v2928_v10 }
0x15e4   :  { %1825 = vmatprep.subr.bf16.mxu1 %v2936_v16 }
0x15e7   :  { %1826 = vmatpush1.bf16.msra.mxu1 %v2934_v20 }
0x16b5   :  { %v1616_v11 = vpop.f32.mrb[28].mxu1 }
0x16b6   :  { %v1625_v18 = vrot.slane %v1616_v11, 4  ;;  %v1618_v21 = vpop.f32.mrb[29].mxu1 }
0x16b7   :  { %v1626_v19 = vrot.slane %v1618_v21, 4  ;;  %v1620_v23 = vpop.f32.mrb[30].mxu1  ;;  %v2940_v21 = vld [vmem:[%s4172_s12 + $0x20] ss:$8 sps:$4 sm:$0xff]  }
0x16b8   :  { %v1629_v22 = vadd.f32 %v1625_v18, %v3901_v25  ;;  %v1621_v24 = vpop.f32.mrb[31].mxu1  ;;  %v3972_v18 = vld [vmem:[#allocation14 + $0x24] ss:$8 sps:$4 sm:$0xff]   ;;  %v3980_v23 = vld [vmem:[#allocation14 + $0x20] ss:$8 sps:$4 sm:$0xff]  }
0x16b9   :  { %v1630_v26 = vadd.f32 %v1626_v19, %v3903_v27  ;;  %v2942_v19 = vld [vmem:[%s4172_s12 + $0x24] ss:$8 sps:$4 sm:$0xff]  }
0x16ba   :  { %v2676_v28 = vmul.f32 -1.442695, %v1629_v22  ;;  %v3983_v24 = vld [vmem:[#allocation14 + $0x34] ss:$8 sps:$4 sm:$0xff]   ;;  %1827 = vmatprep.subr.bf16.mxu1 %v2942_v19 }
0x16bb   :  { %v2677_v30 = vmul.f32 -1.442695, %v1630_v26  ;;  %v2948_v26 = vld [vmem:[%s4172_s12 + $0x34] ss:$8 sps:$4 sm:$0xff]   ;;  %1828 = vmatpush1.bf16.msra.mxu1 %v2940_v21 }
0x16bc   :  { %3066 = vpow2.f32 %v2676_v28  ;;  %v3990_v28 = vld [vmem:[#allocation14 + $0x30] ss:$8 sps:$4 sm:$0xff]   ;;  %1829 = vmatprep.subr.bf16.mxu1 %v2948_v26 }
0x16bd   :  { %3068 = vpow2.f32 %v2677_v30  ;;  %v2946_v30 = vld [vmem:[%s4172_s12 + $0x30] ss:$8 sps:$4 sm:$0xff]  }
0x16bf   :  { %1830 = vmatpush1.bf16.msra.mxu1 %v2946_v30 }
0x16c6   :  { %v3067_v31 = vpop.eup %3066 }
0x16c7   :  { %v3069_v32 = vpop.eup %3068  ;;  %v1637_v33 = vadd.f32 1.0, %v3067_v31 }
0x16c8   :  { %v1638_v51 = vadd.f32 1.0, %v3069_v32 }
0x16c9   :  { %3070 = vrcp.f32 %v1637_v33 }
0x16ca   :  { %3072 = vrcp.f32 %v1638_v51 }
0x16d3   :  { %v3071_v34 = vpop.eup %3070 }
0x16d4   :  { %v3073_v35 = vpop.eup %3072  ;;  %v1648_v29 = vmul.f32 %v3071_v34, %v1646_v53 }
0x16d5   :  { %v1643_v36 = vmul.f32 2.0, %v3073_v35 }
0x16d7   :  { %v2678_v37 = vadd.f32 -1.0, %v1643_v36 }
0x16d9   :  { %v1649_v39 = vmul.f32 %v3071_v34, %v2678_v37  ;;  %v1768_v37 = vld [vmem:[%s4174_s14] sm:$0x3] }
0x16db   :  { %1651 = vrot.lane.b32.xlu1 %v1649_v39, %s3354_s24  ;;  %v1773_v39 = vrot.slane %v1768_v37, %v3653_v45 }
0x174d   :  { %v1652_v40 = vpop.permute.xlu1 %1651 }
0x174e   :  { %v1654_v38 = vadd.f32 %v1652_v40, %v1648_v29  ;;  %v1777_v40 = vrot.slane %v1768_v37, %v3655_v46 }
0x1750   :  { %3074 = vtanh.f32 %v1654_v38  ;;  %v1734_v58 = vrot.slane %v1654_v38, 6 }
0x175a   :  { %v3075_v41 = vpop.eup %3074 }
0x175b   :  { %v1656_v42 = vmul.f32 %v3075_v41, %v3073_v35 }
0x175d   :  { %v1662_v43 = vpack.c.bf16 %v1656_v42, %v1656_v42 }
0x175f   :  { %v1664_v44 = vrot.slane %v1662_v43, 2 }
0x1761   :  { %1665 = vrot.lane.b32.xlu0 %v1664_v44, %s3354_s24 }
0x1765   :  { %1483 = vrot.lane.b32.xlu0 %v3908_v47, %s3354_s24 }
0x1769   :  { %1658 = vrot.lane.b32.xlu0 %v1656_v42, %s3354_s24 }
0x17d3   :  { %v1666_v48 = vpop.permute.xlu0 %1665 }
0x17d4   :  { %2679 = vmatmul.mubr.msk.bf16.vlgmr.msra.gmra.mrb[32].mxu0 %vm432_vm7, %v1666_v48 }
0x17d5   :  { %1936 = vmatprep.mubr.bf16.mxu0 %v3350_v0 }
0x17d7   :  { %v1484_v49 = vpop.permute.xlu0 %1483 }
0x17d8   :  { %1486 = vst.msk [vmem:[#allocation2] sm:$0x3] %vm506_vm8, %v1484_v49 }
0x17db   :  { %v1659_v50 = vpop.permute.xlu0 %1658 }
0x17dc   :  { %1661 = vst.msk [vmem:[#allocation2] sm:$0x30] %vm683_vm9, %v1659_v50 }
0x18a7   :  { %v1704_v52 = vpop.f32.mrb[32].mxu0 }
0x18a8   :  { %v1713_v7 = vrot.slane %v1704_v52, 2  ;;  %v1706_v9 = vpop.f32.mrb[33].mxu0 }
0x18a9   :  { %v1714_v54 = vrot.slane %v1706_v9, 2  ;;  %v1708_v55 = vpop.f32.mrb[34].mxu0 }
0x18aa   :  { %v1717_v47 = vadd.f32 %v1713_v7, %v3901_v25  ;;  %v1709_v56 = vpop.f32.mrb[35].mxu0 }
0x18ab   :  { %v1718_v57 = vadd.f32 %v1714_v54, %v3903_v27  ;;  %v3946_v27 = vld [vmem:[#allocation14 + $0x4] ss:$8 sps:$4 sm:$0xff]  }
0x18ac   :  { %v2680_v59 = vmul.f32 -1.442695, %v1717_v47  ;;  %1904 = vmatprep.subr.bf16.mxu0 %v3946_v27  ;;  %1982 = vmatprep.subr.bf16.mxu1 %v3946_v27 }
0x18ad   :  { %v2681_v60 = vmul.f32 -1.442695, %v1718_v57  ;;  %1905 = vmatpush1.bf16.msra.mxu0 %v3954_v13 }
0x18ae   :  { %3076 = vpow2.f32 %v2680_v59  ;;  %1906 = vmatprep.subr.bf16.mxu0 %v3956_v14 }
0x18af   :  { %3078 = vpow2.f32 %v2681_v60 }
0x18b1   :  { %1907 = vmatpush1.bf16.msra.mxu0 %v3965_v17 }
0x18b2   :  { %1908 = vmatprep.subr.bf16.mxu0 %v3972_v18 }
0x18b5   :  { %1909 = vmatpush1.bf16.msra.mxu0 %v3980_v23 }
0x18b6   :  { %1910 = vmatprep.subr.bf16.mxu0 %v3983_v24 }
0x18b8   :  { %v3077_v61 = vpop.eup %3076 }
0x18b9   :  { %v3079_v62 = vpop.eup %3078  ;;  %v1725_v63 = vadd.f32 1.0, %v3077_v61  ;;  %1911 = vmatpush1.bf16.msra.mxu0 %v3990_v28 }
0x18ba   :  { %v1726_v2 = vadd.f32 1.0, %v3079_v62  ;;  %2070 = vmatprep.subr.bf16.mxu0 %v3946_v27 }
0x18bb   :  { %3080 = vrcp.f32 %v1725_v63 }
0x18bc   :  { %3082 = vrcp.f32 %v1726_v2  ;;  %1937 = vmatmul.mubr.bf16.vlgmr.msra.gmra.mrb[36].mxu0 %v3350_v0 }
0x18bd   :  { %2071 = vmatpush1.bf16.msra.mxu0 %v3954_v13  ;;  %2102 = vmatprep.mubr.bf16.mxu0 %v3350_v0 }
0x18be   :  { %2072 = vmatprep.subr.bf16.mxu0 %v3956_v14 }
0x18c1   :  { %2073 = vmatpush1.bf16.msra.mxu0 %v3965_v17 }
0x18c2   :  { %2074 = vmatprep.subr.bf16.mxu0 %v3972_v18 }
0x18c5   :  { %v3081_v3 = vpop.eup %3080  ;;  %2075 = vmatpush1.bf16.msra.mxu0 %v3980_v23 }
0x18c6   :  { %v3083_v4 = vpop.eup %3082  ;;  %v1736_v5 = vmul.f32 %v3081_v3, %v1734_v58  ;;  %2076 = vmatprep.subr.bf16.mxu0 %v3983_v24 }
0x18c7   :  { %v1731_v6 = vmul.f32 2.0, %v3083_v4 }
0x18c9   :  { %v2682_v8 = vadd.f32 -1.0, %v1731_v6  ;;  %2077 = vmatpush1.bf16.msra.mxu0 %v3990_v28 }
0x18ca   :  { %2791 = vmatprep.subr.bf16.mxu0 %v3351_v1 }
0x18cb   :  { %v1737_v25 = vmul.f32 %v3081_v3, %v2682_v8 }
0x18cd   :  { %1739 = vrot.lane.b32.xlu1 %v1737_v25, %s3354_s24 }
0x18d1   :  { %1570 = vrot.lane.b32.xlu1 %v3925_v15, %s3354_s24 }
0x193f   :  { %v1740_v15 = vpop.permute.xlu1 %1739 }
0x1940   :  { %v1742_v11 = vadd.f32 %v1740_v15, %v1736_v5 }
0x1942   :  { %3084 = vtanh.f32 %v1742_v11 }
0x1943   :  { %v1571_v22 = vpop.permute.xlu1 %1570 }
0x1944   :  { %1573 = vst.msk [vmem:[#allocation2] sm:$0xc] %vm594_vm10, %v1571_v22 }
0x194c   :  { %v3085_v31 = vpop.eup %3084 }
0x194d   :  { %v1744_v32 = vmul.f32 %v3085_v31, %v3083_v4 }
0x194f   :  { %1746 = vrot.lane.b32.xlu1 %v1744_v32, %s3354_s24 }
0x198f   :  { %v1938_v34 = vpop.f32.mrb[36].mxu0 }
0x1990   :  { %v1940_v35 = vpop.f32.mrb[37].mxu0 }
0x1991   :  { %v1942_v29 = vpop.f32.mrb[38].mxu0 }
0x1992   :  { %v1943_v36 = vpop.f32.mrb[39].mxu0 }
0x19c1   :  { %v1747_v33 = vpop.permute.xlu1 %1746 }
0x19c2   :  { %1749 = vst.msk [vmem:[#allocation2] sm:$0xc0] %vm772_vm11, %v1747_v33 }
0x19c9   :  { %v1750_v51 = vld [vmem:[#allocation2] sm:$0xff] }
0x19ca   :  { %v1751_v53 = vpack.c.bf16 %v1750_v51, %v1750_v51 }
0x19cc   :  { %2691 = vmatmul.mubr.msk.bf16.vlgmr.msra.gmra.mrb[32].mxu1 %vm432_vm7, %v1751_v53 }
0x19cd   :  { %1983 = vmatpush1.bf16.msra.mxu1 %v3954_v13  ;;  %2014 = vmatprep.mubr.bf16.mxu1 %v3350_v0 }
0x19ce   :  { %1984 = vmatprep.subr.bf16.mxu1 %v3956_v14 }
0x19d1   :  { %1985 = vmatpush1.bf16.msra.mxu1 %v3965_v17 }
0x19d2   :  { %1986 = vmatprep.subr.bf16.mxu1 %v3972_v18 }
0x19d5   :  { %1987 = vmatpush1.bf16.msra.mxu1 %v3980_v23 }
0x19d6   :  { %1988 = vmatprep.subr.bf16.mxu1 %v3983_v24 }
0x19d9   :  { %1989 = vmatpush1.bf16.msra.mxu1 %v3990_v28 }
0x19da   :  { %2158 = vmatprep.subr.bf16.mxu1 %v3946_v27 }
0x1a9f   :  { %v1857_v38 = vpop.f32.mrb[32].mxu1 }
0x1aa0   :  { %v4026_v41 = vadd.f32 %v1857_v38, %v1773_v39  ;;  %v1859_v42 = vpop.f32.mrb[33].mxu1 }
0x1aa1   :  { %v4028_v43 = vadd.f32 %v1859_v42, %v1777_v40  ;;  %v1861_v44 = vpop.f32.mrb[34].mxu1 }
0x1aa2   :  { %v1945_v48 = vadd.f32 %v1938_v34, %v4026_v41  ;;  %v1862_v49 = vpop.f32.mrb[35].mxu1 }
0x1aa3   :  { %v1946_v50 = vadd.f32 %v1940_v35, %v4028_v43 }
0x1aa4   :  { %v2700_v52 = vmul.f32 -1.442695, %v1945_v48 }
0x1aa5   :  { %v2701_v7 = vmul.f32 -1.442695, %v1946_v50 }
0x1aa6   :  { %3086 = vpow2.f32 %v2700_v52 }
0x1aa7   :  { %3088 = vpow2.f32 %v2701_v7 }
0x1ab0   :  { %v3087_v9 = vpop.eup %3086 }
0x1ab1   :  { %v3089_v45 = vpop.eup %3088  ;;  %v1953_v46 = vadd.f32 1.0, %v3087_v9 }
0x1ab2   :  { %v1954_v54 = vadd.f32 1.0, %v3089_v45 }
0x1ab4   :  { %3090 = vrcp.f32 %v1954_v54 }
0x1ab5   :  { %3092 = vrcp.f32 %v1953_v46 }
0x1abe   :  { %v3091_v55 = vpop.eup %3090 }
0x1abf   :  { %v1959_v47 = vmul.f32 2.0, %v3091_v55  ;;  %v3093_v57 = vpop.eup %3092 }
0x1ac0   :  { %v1961_v60 = vmul.f32 0.0, %v3093_v57 }
0x1ac1   :  { %v2702_v56 = vadd.f32 -1.0, %v1959_v47 }
0x1ac3   :  { %v1962_v59 = vmul.f32 %v3093_v57, %v2702_v56  ;;  %v2951_v57 = vld [vmem:[%s4175_s15 + $0x28] sm:$0xff]  }
0x1ac5   :  { %1964 = vrot.lane.b32.xlu0 %v1962_v59, %s3354_s24  ;;  %v2952_v59 = vld [vmem:[%s4175_s15 + $0x30] sm:$0xff]  }
0x1b37   :  { %v1965_v61 = vpop.permute.xlu0 %1964 }
0x1b38   :  { %v1967_v62 = vadd.f32 %v1965_v61, %v1961_v60 }
0x1b3a   :  { %3094 = vtanh.f32 %v1967_v62  ;;  %v2046_v15 = vrot.slane %v1967_v62, 6  ;;  %v2953_v62 = vld [vmem:[%s4175_s15 + $0x38] sm:$0xff]  }
0x1b44   :  { %v3095_v63 = vpop.eup %3094 }
0x1b45   :  { %v4033_v2 = vmul.f32 %v3095_v63, %v3091_v55  ;;  %v2950_v55 = vld [vmem:[%s4175_s15 + $0x20] sm:$0xff]  }
0x1b47   :  { %v1975_v58 = vpack.c.bf16 %v4033_v2, %v4033_v2 }
0x1b49   :  { %1977 = vrot.lane.b32.xlu1 %v1975_v58, %s3354_s24 }
0x1bbb   :  { %v1978_v3 = vpop.permute.xlu1 %1977 }
0x1bbc   :  { %2703 = vmatmul.mubr.msk.bf16.vlgmr.msra.gmra.mrb[36].mxu1 %vm432_vm7, %v1978_v3 }
0x1bbd   :  { %2159 = vmatpush1.bf16.msra.mxu1 %v3954_v13  ;;  %2190 = vmatprep.mubr.bf16.mxu1 %v3350_v0 }
0x1bbe   :  { %2160 = vmatprep.subr.bf16.mxu1 %v3956_v14 }
0x1bc1   :  { %2161 = vmatpush1.bf16.msra.mxu1 %v3965_v17 }
0x1bc2   :  { %2162 = vmatprep.subr.bf16.mxu1 %v3972_v18 }
0x1bc5   :  { %2163 = vmatpush1.bf16.msra.mxu1 %v3980_v23 }
0x1bc6   :  { %2164 = vmatprep.subr.bf16.mxu1 %v3983_v24 }
0x1bc9   :  { %2165 = vmatpush1.bf16.msra.mxu1 %v3990_v28 }
0x1bca   :  { %2803 = vmatprep.subr.bf16.mxu1 %v3351_v1 }
0x1c8f   :  { %v2016_v4 = vpop.f32.mrb[36].mxu1 }
0x1c90   :  { %v2025_v5 = vrot.slane %v2016_v4, 6  ;;  %v2018_v6 = vpop.f32.mrb[37].mxu1 }
0x1c91   :  { %v2026_v8 = vrot.slane %v2018_v6, 6  ;;  %v2020_v25 = vpop.f32.mrb[38].mxu1 }
0x1c92   :  { %v2029_v0 = vadd.f32 %v2025_v5, %v4026_v41  ;;  %v2021_v27 = vpop.f32.mrb[39].mxu1 }
0x1c93   :  { %v2030_v10 = vadd.f32 %v2026_v8, %v4028_v43  ;;  %v2954_v8 = vld [vmem:[%s4175_s15 + $0x40] sm:$0xff]   ;;  %v2956_v27 = vld [vmem:[%s4175_s15 + $0x50] sm:$0xff]  }
0x1c94   :  { %v2704_v12 = vmul.f32 -1.442695, %v2029_v0  ;;  %v2955_v0 = vld [vmem:[%s4175_s15 + $0x48] sm:$0xff]  }
0x1c95   :  { %v2705_v13 = vmul.f32 -1.442695, %v2030_v10  ;;  %v2957_v10 = vld [vmem:[%s4175_s15 + $0x58] sm:$0xff]  }
0x1c96   :  { %3096 = vpow2.f32 %v2704_v12 }
0x1c97   :  { %3098 = vpow2.f32 %v2705_v13 }
0x1ca0   :  { %v3097_v14 = vpop.eup %3096 }
0x1ca1   :  { %v3099_v16 = vpop.eup %3098  ;;  %v2037_v17 = vadd.f32 1.0, %v3097_v14  ;;  %v2958_v14 = vld [vmem:[%s4175_s15] sm:$0xff]  }
0x1ca2   :  { %v2038_v20 = vadd.f32 1.0, %v3099_v16 }
0x1ca3   :  { %3100 = vrcp.f32 %v2037_v17 }
0x1ca4   :  { %3102 = vrcp.f32 %v2038_v20 }
0x1cad   :  { %v3101_v11 = vpop.eup %3100 }
0x1cae   :  { %v3103_v18 = vpop.eup %3102  ;;  %v2048_v21 = vmul.f32 %v3101_v11, %v2046_v15 }
0x1caf   :  { %v2043_v19 = vmul.f32 2.0, %v3103_v18 }
0x1cb1   :  { %v2706_v23 = vadd.f32 -1.0, %v2043_v19 }
0x1cb3   :  { %v2049_v22 = vmul.f32 %v3101_v11, %v2706_v23 }
0x1cb5   :  { %2051 = vrot.lane.b32.xlu0 %v2049_v22, %s3354_s24 }
0x1d27   :  { %v2052_v24 = vpop.permute.xlu0 %2051 }
0x1d28   :  { %v2054_v26 = vadd.f32 %v2052_v24, %v2048_v21 }
0x1d2a   :  { %3104 = vtanh.f32 %v2054_v26  ;;  %v2134_v50 = vrot.slane %v2054_v26, 6 }
0x1d34   :  { %v3105_v28 = vpop.eup %3104 }
0x1d35   :  { %v2056_v30 = vmul.f32 %v3105_v28, %v3103_v18 }
0x1d37   :  { %v2062_v31 = vpack.c.bf16 %v2056_v30, %v2056_v30 }
0x1d39   :  { %v2064_v32 = vrot.slane %v2062_v31, 1 }
0x1d3b   :  { %2065 = vrot.lane.b32.xlu1 %v2064_v32, %s3354_s24 }
0x1dad   :  { %v2066_v33 = vpop.permute.xlu1 %2065 }
0x1dae   :  { %2707 = vmatmul.mubr.msk.bf16.vlgmr.msra.gmra.mrb[40].mxu0 %vm432_vm7, %v2066_v33 }
0x1daf   :  { %2799 = vmatprep.mubr.msk.bf16.mxu0 %vm3352_vm0, %v3351_v1  ;;  %2792 = vmatpush3.bf16.msra.mxu0 %v2950_v55  ;;  %v2964_v55 = vld [vmem:[%s4175_s15 + $0x70] sm:$0xff]  }
0x1db0   :  { %2793 = vmatprep.subr.bf16.mxu0 %v3351_v1 }
0x1db3   :  { %2794 = vmatpush3.bf16.msra.mxu0 %v2951_v57 }
0x1db4   :  { %2795 = vmatprep.subr.bf16.mxu0 %v3351_v1 }
0x1db7   :  { %2796 = vmatpush3.bf16.msra.mxu0 %v2952_v59 }
0x1db8   :  { %2797 = vmatprep.subr.bf16.mxu0 %v3351_v1 }
0x1dbb   :  { %2798 = vmatpush3.bf16.msra.mxu0 %v2953_v62 }
0x1dbc   :  { %2815 = vmatprep.subr.bf16.mxu0 %v3351_v1 }
0x1e81   :  { %v2104_v51 = vpop.f32.mrb[40].mxu0 }
0x1e82   :  { %v2113_v53 = vrot.slane %v2104_v51, 4  ;;  %v2106_v34 = vpop.f32.mrb[41].mxu0 }
0x1e83   :  { %v2114_v35 = vrot.slane %v2106_v34, 4  ;;  %v2108_v29 = vpop.f32.mrb[42].mxu0 }
0x1e84   :  { %v2117_v36 = vadd.f32 %v2113_v53, %v4026_v41  ;;  %v2109_v37 = vpop.f32.mrb[43].mxu0  ;;  %v2960_v53 = vld [vmem:[%s4175_s15 + $0x10] sm:$0xff]  }
0x1e85   :  { %v2118_v39 = vadd.f32 %v2114_v35, %v4028_v43 }
0x1e86   :  { %v2708_v40 = vmul.f32 -1.442695, %v2117_v36 }
0x1e87   :  { %v2709_v38 = vmul.f32 -1.442695, %v2118_v39 }
0x1e88   :  { %3106 = vpow2.f32 %v2708_v40 }
0x1e89   :  { %3108 = vpow2.f32 %v2709_v38 }
0x1e92   :  { %v3107_v42 = vpop.eup %3106 }
0x1e93   :  { %v3109_v44 = vpop.eup %3108  ;;  %v2125_v48 = vadd.f32 1.0, %v3107_v42  ;;  %v2961_v42 = vld [vmem:[%s4175_s15 + $0x18] sm:$0xff]  }
0x1e94   :  { %v2126_v49 = vadd.f32 1.0, %v3109_v44 }
0x1e95   :  { %3110 = vrcp.f32 %v2125_v48 }
0x1e96   :  { %3112 = vrcp.f32 %v2126_v49 }
0x1e9f   :  { %v3111_v52 = vpop.eup %3110 }
0x1ea0   :  { %v3113_v7 = vpop.eup %3112  ;;  %v2136_v9 = vmul.f32 %v3111_v52, %v2134_v50 }
0x1ea1   :  { %v2131_v45 = vmul.f32 2.0, %v3113_v7 }
0x1ea3   :  { %v2710_v54 = vadd.f32 -1.0, %v2131_v45 }
0x1ea5   :  { %v2137_v46 = vmul.f32 %v3111_v52, %v2710_v54 }
0x1ea7   :  { %2139 = vrot.lane.b32.xlu0 %v2137_v46, %s3354_s24 }
0x1f19   :  { %v2140_v47 = vpop.permute.xlu0 %2139 }
0x1f1a   :  { %v4062_v56 = vadd.f32 %v2140_v47, %v2136_v9  ;;  %v2962_v9 = vld [vmem:[%s4175_s15 + $0x60] sm:$0xff]   ;;  %v2965_v47 = vld [vmem:[%s4175_s15 + $0x78] sm:$0xff]  }
0x1f1c   :  { %3114 = vtanh.f32 %v4062_v56 }
0x1f26   :  { %v3115_v60 = vpop.eup %3114 }
0x1f27   :  { %v2144_v61 = vmul.f32 %v3115_v60, %v3113_v7 }
0x1f29   :  { %v2150_v63 = vpack.c.bf16 %v2144_v61, %v2144_v61 }
0x1f2b   :  { %v2152_v58 = vrot.slane %v2150_v63, 2 }
0x1f2d   :  { %2153 = vrot.lane.b32.xlu1 %v2152_v58, %s3354_s24 }
0x1f31   :  { %2058 = vrot.lane.b32.xlu1 %v2056_v30, %s3354_s24 }
0x1f35   :  { %2146 = vrot.lane.b32.xlu1 %v2144_v61, %s3354_s24 }
0x1f9f   :  { %v2154_v3 = vpop.permute.xlu1 %2153 }
0x1fa0   :  { %2711 = vmatmul.mubr.msk.bf16.vlgmr.msra.gmra.mrb[40].mxu1 %vm432_vm7, %v2154_v3 }
0x1fa1   :  { %2811 = vmatprep.mubr.msk.bf16.mxu1 %vm3352_vm0, %v3351_v1  ;;  %2804 = vmatpush3.bf16.msra.mxu1 %v2958_v14 }
0x1fa2   :  { %2805 = vmatprep.subr.bf16.mxu1 %v3351_v1 }
0x1fa3   :  { %v2059_v4 = vpop.permute.xlu1 %2058 }
0x1fa4   :  { %2061 = vst.msk [vmem:[#allocation2] sm:$0xc] %vm594_vm10, %v2059_v4 }
0x1fa7   :  { %v2147_v5 = vpop.permute.xlu1 %2146 }
0x1fa8   :  { %2149 = vst.msk [vmem:[#allocation2] sm:$0x30] %vm683_vm9, %v2147_v5  ;;  %v2735_v5 = vld [vmem:[#allocation15] ss:$0 sm:$0xff] }
0x1fab   :  { %v2248_v6 = vld [vmem:[#allocation2 + $0x2] sm:$0x3] }
0x1fac   :  { %v2249_v25 = vpack.c.bf16 %v2248_v6, %v2248_v6 }
0x1fae   :  { %2800 = vmatmul.mubr.msk.bf16.vlgmr.msra.gmra.mrb[44].mxu0 %vm432_vm7, %v2249_v25 }
0x1faf   :  { %2816 = vmatpush3.bf16.msra.mxu0 %v2954_v8  ;;  %2823 = vmatprep.mubr.msk.bf16.mxu0 %vm3352_vm0, %v3351_v1  ;;  %v2392_v12 = vld [vmem:[#allocation2 + $0x4] sm:$0x3] }
0x1fb0   :  { %2817 = vmatprep.subr.bf16.mxu0 %v3351_v1  ;;  %v2393_v13 = vpack.c.bf16 %v2392_v12, %v2392_v12 }
0x1fb3   :  { %2818 = vmatpush3.bf16.msra.mxu0 %v2955_v0 }
0x1fb4   :  { %2819 = vmatprep.subr.bf16.mxu0 %v3351_v1 }
0x1fb7   :  { %2820 = vmatpush3.bf16.msra.mxu0 %v2956_v27 }
0x1fb8   :  { %2821 = vmatprep.subr.bf16.mxu0 %v3351_v1 }
0x1fbb   :  { %2822 = vmatpush3.bf16.msra.mxu0 %v2957_v10 }
0x1fbe   :  { %2824 = vmatmul.mubr.msk.bf16.vlgmr.msra.gmra.mrb[48].mxu0 %vm432_vm7, %v2393_v13 }
0x2073   :  { %v2192_v16 = vpop.f32.mrb[40].mxu1 }
0x2074   :  { %v2201_v17 = vrot.slane %v2192_v16, 2  ;;  %v2194_v20 = vpop.f32.mrb[41].mxu1 }
0x2075   :  { %v2202_v15 = vrot.slane %v2194_v20, 2  ;;  %v2196_v11 = vpop.f32.mrb[42].mxu1 }
0x2076   :  { %v2205_v18 = vadd.f32 %v2201_v17, %v4026_v41  ;;  %v2197_v21 = vpop.f32.mrb[43].mxu1  ;;  %v2959_v41 = vld [vmem:[%s4175_s15 + $0x8] sm:$0xff]  }
0x2077   :  { %v2206_v19 = vadd.f32 %v2202_v15, %v4028_v43  ;;  %v2222_v43 = vrot.slane %v4062_v56, 6  ;;  %2806 = vmatpush3.bf16.msra.mxu1 %v2959_v41 }
0x2078   :  { %v2712_v23 = vmul.f32 -1.442695, %v2205_v18  ;;  %2807 = vmatprep.subr.bf16.mxu1 %v3351_v1 }
0x2079   :  { %v2713_v22 = vmul.f32 -1.442695, %v2206_v19 }
0x207a   :  { %3116 = vpow2.f32 %v2712_v23 }
0x207b   :  { %3118 = vpow2.f32 %v2713_v22  ;;  %2808 = vmatpush3.bf16.msra.mxu1 %v2960_v53 }
0x207c   :  { %2809 = vmatprep.subr.bf16.mxu1 %v3351_v1 }
0x207f   :  { %2810 = vmatpush3.bf16.msra.mxu1 %v2961_v42 }
0x2080   :  { %2827 = vmatprep.subr.bf16.mxu1 %v3351_v1 }
0x2081   :  { %v2319_v24 = vpop.f32.mrb[44].mxu0 }
0x2082   :  { %v2801_v26 = vpop.f32.mrb[45].mxu0 }
0x2083   :  { %v2322_v28 = vpop.f32.mrb[46].mxu0 }
0x2084   :  { %v3117_v30 = vpop.eup %3116  ;;  %v2802_v31 = vpop.f32.mrb[47].mxu0 }
0x2085   :  { %v3119_v32 = vpop.eup %3118  ;;  %v2213_v33 = vadd.f32 1.0, %v3117_v30 }
0x2086   :  { %v2214_v51 = vadd.f32 1.0, %v3119_v32 }
0x2087   :  { %3120 = vrcp.f32 %v2213_v33 }
0x2088   :  { %3122 = vrcp.f32 %v2214_v51 }
0x2091   :  { %v3121_v34 = vpop.eup %3120  ;;  %v2463_v35 = vpop.f32.mrb[48].mxu0 }
0x2092   :  { %v3123_v29 = vpop.eup %3122  ;;  %v2825_v36 = vpop.f32.mrb[49].mxu0  ;;  %v2224_v37 = vmul.f32 %v3121_v34, %v2222_v43 }
0x2093   :  { %v2466_v39 = vpop.f32.mrb[50].mxu0  ;;  %v2219_v40 = vmul.f32 2.0, %v3123_v29 }
0x2094   :  { %v2826_v38 = vpop.f32.mrb[51].mxu0 }
0x2095   :  { %v2714_v44 = vadd.f32 -1.0, %v2219_v40 }
0x2097   :  { %v2225_v48 = vmul.f32 %v3121_v34, %v2714_v44 }
0x2099   :  { %2227 = vrot.lane.b32.xlu0 %v2225_v48, %s3354_s24 }
0x209d   :  { %1971 = vrot.lane.b32.xlu0 %v4033_v2, %s3354_s24  ;;  %v2963_v2 = vld [vmem:[%s4175_s15 + $0x68] sm:$0xff]   ;;  %s3355_s15 = smov [#allocation17]  }
0x209e   :  { %s2570_s10 = sshll.u32 %s3355_s15, 4  ;;  %s2571_s10 = int_to_ptr.vmem [resolvable:$true] %s2570_s10 }
0x209f   :  { %s3306_s29 = scalar_lea.vmem %s2571_s10, 32  ;;  %p3311_p9 = scmp.lt.s32.totalorder %s2571_s10, %s2571_s10 }
0x20a0   :  { %p3307_p8 = scmp.ne.s32.totalorder %s2571_s10, %s3306_s29  ;;  %p3312_p10 = scmp.lt.s32.totalorder %s3306_s29, %s3306_s29 }
0x20a2   :  { %p3313_p11 = por %p3312_p10, %p3311_p9 }
0x20a4   :  { %p3314_p12 = pnand %p3313_p11, %p3307_p8 }
0x210b   :  { %v2228_v49 = vpop.permute.xlu0 %2227 }
0x210c   :  { %v2230_v50 = vadd.f32 %v2228_v49, %v2224_v37 }
0x210e   :  { %3124 = vtanh.f32 %v2230_v50 }
0x210f   :  { %v1972_v52 = vpop.permute.xlu0 %1971 }
0x2110   :  { %1974 = vst.msk [vmem:[#allocation2] sm:$0x3] %vm506_vm8, %v1972_v52 }
0x2117   :  { %v2238_v7 = vld [vmem:[#allocation2] sm:$0x3] }
0x2118   :  { %v3125_v45 = vpop.eup %3124  ;;  %v2239_v54 = vpack.c.bf16 %v2238_v7, %v2238_v7 }
0x2119   :  { %v2232_v46 = vmul.f32 %v3125_v45, %v3123_v29 }
0x211a   :  { %2812 = vmatmul.mubr.msk.bf16.vlgmr.msra.gmra.mrb[44].mxu1 %vm432_vm7, %v2239_v54 }
0x211b   :  { %2234 = vrot.lane.b32.xlu0 %v2232_v46, %s3354_s24  ;;  %2828 = vmatpush3.bf16.msra.mxu1 %v2962_v9 }
0x211c   :  { %2829 = vmatprep.subr.bf16.mxu1 %v3351_v1  ;;  %2835 = vmatprep.mubr.msk.bf16.mxu1 %vm3352_vm0, %v3351_v1 }
0x211f   :  { %2830 = vmatpush3.bf16.msra.mxu1 %v2963_v2 }
0x2120   :  { %2831 = vmatprep.subr.bf16.mxu1 %v3351_v1 }
0x2123   :  { %2832 = vmatpush3.bf16.msra.mxu1 %v2964_v55 }
0x2124   :  { %2833 = vmatprep.subr.bf16.mxu1 %v3351_v1 }
0x2127   :  { %2834 = vmatpush3.bf16.msra.mxu1 %v2965_v47 }
0x218d   :  { %v2235_v56 = vpop.permute.xlu0 %2234 }
0x218e   :  { %2237 = vst.msk [vmem:[#allocation2] sm:$0xc0] %vm772_vm11, %v2235_v56 }
0x2195   :  { %v2470_v57 = vld [vmem:[#allocation2 + $0x6] sm:$0x3] }
0x2196   :  { %v2471_v59 = vpack.c.bf16 %v2470_v57, %v2470_v57 }
0x2198   :  { %2836 = vmatmul.mubr.msk.bf16.vlgmr.msra.gmra.mrb[48].mxu1 %vm432_vm7, %v2471_v59 }
0x21ed   :  { %v2386_v60 = vpop.f32.mrb[44].mxu1 }
0x21ee   :  { %v2387_v61 = vadd.f32 %v2386_v60, %v2319_v24  ;;  %v2813_v62 = vpop.f32.mrb[45].mxu1 }
0x21ef   :  { %v2389_v63 = vpop.f32.mrb[46].mxu1 }
0x21f0   :  { %v2814_v58 = vpop.f32.mrb[47].mxu1  ;;  %v2469_v3 = vadd.f32 %v2463_v35, %v2387_v61 }
0x226b   :  { %v2541_v4 = vpop.f32.mrb[48].mxu1 }
0x226c   :  { %v2547_v6 = vadd.f32 %v2541_v4, %v2469_v3  ;;  %v2837_v8 = vpop.f32.mrb[49].mxu1 }
0x226d   :  { %v2544_v25 = vpop.f32.mrb[50].mxu1 }
0x226e   :  { %v2555_v1 = vadd.f32 %v2735_v5, %v2547_v6  ;;  %v2838_v0 = vpop.f32.mrb[51].mxu1 }
0x2270   :  { %v2736_v27 = vmul.f32 -1.442695, %v2555_v1 }
0x2272   :  { %3126 = vpow2.f32 %v2736_v27 }
0x227c   :  { %v3127_v10 = vpop.eup %3126 }
0x227d   :  { %v2559_v12 = vadd.f32 1.0, %v3127_v10 }
0x227f   :  { %3128 = vrcp.f32 %v2559_v12 }
0x2289   :  { %v3129_v13 = vpop.eup %3128 }
0x228a   :  { %2563 = vst.msk [vmem:[#allocation17] sm:$0x3] %vm2562_vm12, %v3129_v13 }
0x228b   :  { %3317 = shalt.err (!%p3314_p12)
}
0x228c   :  { %s3318_s18 = scalar_lea.hbm %s4177_s17, 32 }
0x228d   :  { %p3319_p13 = scmp.ne.s32.totalorder %s4177_s17, %s3318_s18  ;;  %p3322_p0 = scmp.lt.u32.totalorder %s3318_s18, %s4177_s17 }
0x228f   :  { %p3324_p1 = pnand %p3322_p0, %p3319_p13 }
0x2291   :  { %3327 = shalt.err (!%p3324_p1)
}
0x2292   :  { %2573 = dma.vmem_to_hbm [thread:$0]  %s2571_s10, 32, %s4177_s17, [#allocation5]  }
0x2293   :  { %3338 = dma.done.wait [#allocation5], 32  }
0x2294   :  { %3339 = vsyncadd [#allocation5], 4294967264 }
0x2295   :  { %2577 = vsyncpa [#allocation4], 1 }
0x2296   :  { %2578 = vsyncpa [#allocation7], 1 }
0x2297   :  { %2579 = vsyncpa [#allocation10], 1 }
0x2298   :  { %2580 = vsyncpa [#allocation13], 1 }
0x2299   :  { %2581 = vsyncpa [#allocation16], 1 }
0x229a   :  { %2582 = vsyncpa [#allocation5], 1 }

</bundles_post_ra>
